<compile_context>
chip_gen: v7x
topology: tpu7x:2x2x1
jax: 0.10.0
libtpu: 0.0.40
codegen_flags: <defaults>
</compile_context>

<pallas_src>
import math

import jax
import jax.numpy as jnp
from jax.experimental import pallas as pl
from jax.experimental.pallas import tpu as pltpu


_HIDDEN = (512, 256, 128, 64)


def _mlp_kernel(x_ref,
                w0_ref, b0_ref,
                w1_ref, b1_ref,
                w2_ref, b2_ref,
                w3_ref, b3_ref,
                wf_ref, bf_ref,
                o_ref):
    """Fused Discriminator forward: 4x (Linear + LeakyReLU(0.2)) + final Linear."""

    def linear_lrelu(h_bf16, w_ref, b_ref):
        # bf16 operands into the MXU, f32 accumulation; bias + LeakyReLU in f32
        # (v5e has no bf16 VPU path). max(y, 0.2*y) == LeakyReLU(0.2).
        y = jnp.dot(h_bf16, w_ref[...],
                    preferred_element_type=jnp.float32) + b_ref[...]
        return jnp.maximum(y, 0.2 * y)

    # Input arrives already in bf16 — feed it straight to the MXU.
    h = linear_lrelu(x_ref[...], w0_ref, b0_ref)                 # (tb, 512) f32
    h = linear_lrelu(h.astype(jnp.bfloat16), w1_ref, b1_ref)     # (tb, 256) f32
    h = linear_lrelu(h.astype(jnp.bfloat16), w2_ref, b2_ref)     # (tb, 128) f32
    h = linear_lrelu(h.astype(jnp.bfloat16), w3_ref, b3_ref)     # (tb, 64)  f32

    # final_fc (64 -> 1): VPU multiply + cross-lane (XLU) reduction instead of
    # an N=1 MXU pass. wf_ref is stored as a (1, 64) row.
    wf_row = wf_ref[...].astype(jnp.float32)                        # (1, 64)
    y = jnp.sum(h * wf_row, axis=-1, keepdims=True) + bf_ref[...]   # (tb, 1)
    o_ref[...] = y.astype(o_ref.dtype)


def init_discriminator_params(key, input_size):
    """Deterministic f32 init mirroring nn.Linear shapes (weights stored (in, out))."""
    dims = [input_size] + list(_HIDDEN) + [1]
    params = []
    for i in range(len(dims) - 1):
        fan_in, fan_out = dims[i], dims[i + 1]
        key, kw, kb = jax.random.split(key, 3)
        bound = 1.0 / math.sqrt(fan_in)
        w = jax.random.uniform(kw, (fan_in, fan_out), jnp.float32, -bound, bound)
        b = jax.random.uniform(kb, (fan_out,), jnp.float32, -bound, bound)
        params.append((w, b))
    return params


def pack_params_for_kernel(params):
    """One-time packing (at init, not per forward): hidden weights -> bf16
    (in, out); final weight -> bf16 (1, 64) row; biases -> f32 (1, out)."""
    packed = []
    n = len(params)
    for i, (w, b) in enumerate(params):
        if i == n - 1:
            packed.append(jnp.asarray(w.T, dtype=jnp.bfloat16))    # (1, 64)
        else:
            packed.append(jnp.asarray(w, dtype=jnp.bfloat16))      # (in, out)
        packed.append(jnp.asarray(b, dtype=jnp.float32).reshape(1, -1))
    return packed


def _round_up(v, m):
    return ((v + m - 1) // m) * m


def _vmem_estimate(tile_b, in_features, param_bytes):
    """Conservative VMEM footprint for one grid step."""
    # Double-buffered bf16 input tile + double-buffered f32 output tile.
    io_bytes = 2 * tile_b * in_features * 2 + 2 * tile_b * 4
    # Intermediate activations: f32 result + bf16 matmul-input copy per layer.
    act_bytes = tile_b * sum(h * (4 + 2) for h in _HIDDEN)
    # Resident parameters (count 2 pipeline buffers each, to be safe).
    return io_bytes + act_bytes + 2 * param_bytes


# Budget chosen to be safe on every generation: v7x is the tightest
# (64 MiB physical VMEM per TC, 32 MiB scoped default); v5e/v6e have 128 MiB.
_VMEM_BUDGET = 28 << 20


def _choose_batch_tile(B, in_features, param_bytes, desired_tile_b):
    """Pick the batch tile: multiple of 8 (sublane), >=2 grid steps when the
    batch allows it (v7x has 2 TensorCores), and within the VMEM budget."""
    tile = max(8, min(_round_up(desired_tile_b, 8), _round_up(pl.cdiv(B, 2), 8)))
    while tile > 8 and _vmem_estimate(tile, in_features, param_bytes) > _VMEM_BUDGET:
        tile = max(8, _round_up(tile // 2, 8))
    b_pad = _round_up(B, tile)
    return tile, b_pad


def discriminator_forward(x, packed_params, *, desired_tile_b=512):
    """x: (B, ...) any trailing shape; packed_params: pack_params_for_kernel output."""
    B = x.shape[0]
    # Stream the input in bf16: halves the HBM bytes the kernel is bound by.
    x2d = x.reshape(B, -1).astype(jnp.bfloat16)    # == x.view(B, -1)
    in_features = x2d.shape[1]

    param_bytes = sum(int(a.size) * a.dtype.itemsize for a in packed_params)
    tile_b, b_pad = _choose_batch_tile(B, in_features, param_bytes, desired_tile_b)

    # Pad ragged batches up to a tile multiple; pad rows are sliced off below.
    if b_pad != B:
        x2d = jnp.pad(x2d, ((0, b_pad - B), (0, 0)))
    grid = (b_pad // tile_b,)

    in_specs = [pl.BlockSpec((tile_b, in_features), lambda i: (i, 0))]
    for a in packed_params:
        # Constant index_map -> parameters stay VMEM-resident across grid steps.
        # TODO(synk): pipeline_mode=pl.Buffered(1) would single-buffer these
        # constant blocks and halve resident-param VMEM once supported here.
        in_specs.append(pl.BlockSpec(a.shape, lambda i: (0, 0)))
    out_specs = pl.BlockSpec((tile_b, 1), lambda i: (i, 0))
    out_shape = jax.ShapeDtypeStruct((b_pad, 1), jnp.float32)

    # Cost estimate: 2*B*in*out flops per layer; bytes = params + bf16 in + f32 out.
    weight_sizes = [int(packed_params[2 * i].size)
                    for i in range(len(packed_params) // 2)]
    flops = sum(2 * b_pad * s for s in weight_sizes)
    bytes_accessed = param_bytes + b_pad * in_features * 2 + b_pad * 4
    cost = pl.CostEstimate(flops=flops, transcendentals=0,
                           bytes_accessed=bytes_accessed)

    # VMEM limit: actual footprint (inputs, activations, resident params) + headroom,
    # capped at the v7x-safe 32 MiB scoped ceiling.
    vmem_limit = _vmem_estimate(tile_b, in_features, param_bytes) + (4 << 20)
    vmem_limit = int(min(max(vmem_limit, 4 << 20), 32 << 20))

    fn = pl.pallas_call(
        _mlp_kernel,
        out_shape=out_shape,
        grid=grid,
        in_specs=in_specs,
        out_specs=out_specs,
        compiler_params=pltpu.CompilerParams(
            dimension_semantics=("parallel",),
            vmem_limit_bytes=vmem_limit,
        ),
        cost_estimate=cost,
    )
    out = fn(x2d, *packed_params)
    return out[:B]


def reference_forward_bf16(x, packed_params):
    """Plain-JAX mirror of the kernel's exact precision recipe
    (bf16 matmul operands, f32 accumulation, f32 epilogue)."""
    h = x.reshape(x.shape[0], -1).astype(jnp.bfloat16)
    n_layers = len(packed_params) // 2
    for i in range(n_layers - 1):
        w = packed_params[2 * i]
        b = packed_params[2 * i + 1]
        y = jnp.dot(h.astype(jnp.bfloat16), w,
                    preferred_element_type=jnp.float32) + b
        h = jnp.maximum(y, 0.2 * y)
    wf = packed_params[-2]
    bf = packed_params[-1]
    return jnp.sum(h * wf.astype(jnp.float32), axis=-1, keepdims=True) + bf


def reference_forward_f32(x, params):
    """Full-f32 reference matching the PyTorch module semantics."""
    h = x.reshape(x.shape[0], -1).astype(jnp.float32)
    for i, (w, b) in enumerate(params):
        h = h @ w + b
        if i < len(params) - 1:
            h = jnp.where(h > 0, h, 0.2 * h)
    return h


if __name__ == "__main__":
    key = jax.random.PRNGKey(0)
    k_x, k_p = jax.random.split(key)

    # Small NCHW-like input: (batch=2, channels=4, H=16, W=16) -> flat 1024
    x = jax.random.normal(k_x, (2, 4, 16, 16), jnp.float32)
    input_size = 4 * 16 * 16

    params_f32 = init_discriminator_params(k_p, input_size)
    packed = pack_params_for_kernel(params_f32)   # one-time bf16 packing

    out = jax.jit(discriminator_forward)(x, packed)
    out = jax.block_until_ready(out)

    ref_bf16 = reference_forward_bf16(x, packed)
    ref_f32 = reference_forward_f32(x, params_f32)

    assert out.shape == (2, 1), out.shape
    # Tight check vs. a reference using the exact same precision recipe.
    assert jnp.allclose(out, ref_bf16, atol=2e-3, rtol=2e-3), (out, ref_bf16)
    # Loose semantic check vs. the full-f32 PyTorch-equivalent forward
    # (bf16 input + weight rounding -> ~1e-2 relative error expected).
    assert jnp.allclose(out, ref_f32, atol=5e-2, rtol=5e-2), (out, ref_f32)

    print("KERNEL_OK")
</pallas_src>

<mosaic_0001>
module attributes {stable_mosaic.version = 11 : i64} {
  func.func @_mlp_kernel(%arg0: i32, %arg1: memref<8x1024xbf16, #tpu.memory_space<vmem>>, %arg2: memref<1024x512xbf16, #tpu.memory_space<vmem>>, %arg3: memref<1x512xf32, #tpu.memory_space<vmem>>, %arg4: memref<512x256xbf16, #tpu.memory_space<vmem>>, %arg5: memref<1x256xf32, #tpu.memory_space<vmem>>, %arg6: memref<256x128xbf16, #tpu.memory_space<vmem>>, %arg7: memref<1x128xf32, #tpu.memory_space<vmem>>, %arg8: memref<128x64xbf16, #tpu.memory_space<vmem>>, %arg9: memref<1x64xf32, #tpu.memory_space<vmem>>, %arg10: memref<1x64xbf16, #tpu.memory_space<vmem>>, %arg11: memref<1x1xf32, #tpu.memory_space<vmem>>, %arg12: memref<8x1xf32, #tpu.memory_space<vmem>>) attributes {dimension_semantics = [#tpu.dimension_semantics<parallel>], iteration_bounds = array<i64: 1>, scalar_prefetch = 0 : i64, scratch_operands = 0 : i64, tpu.core_type = #tpu.core_type<tc>, window_params = [{transform_indices = @transform_0, window_bounds = array<i64: 8, 1024>}, {pipeline_mode = #tpu.pipeline_mode<synchronous>, transform_indices = @transform_1, window_bounds = array<i64: 1024, 512>}, {pipeline_mode = #tpu.pipeline_mode<synchronous>, transform_indices = @transform_2, window_bounds = array<i64: 1, 512>}, {pipeline_mode = #tpu.pipeline_mode<synchronous>, transform_indices = @transform_3, window_bounds = array<i64: 512, 256>}, {pipeline_mode = #tpu.pipeline_mode<synchronous>, transform_indices = @transform_4, window_bounds = array<i64: 1, 256>}, {pipeline_mode = #tpu.pipeline_mode<synchronous>, transform_indices = @transform_5, window_bounds = array<i64: 256, 128>}, {pipeline_mode = #tpu.pipeline_mode<synchronous>, transform_indices = @transform_6, window_bounds = array<i64: 1, 128>}, {pipeline_mode = #tpu.pipeline_mode<synchronous>, transform_indices = @transform_7, window_bounds = array<i64: 128, 64>}, {pipeline_mode = #tpu.pipeline_mode<synchronous>, transform_indices = @transform_8, window_bounds = array<i64: 1, 64>}, {pipeline_mode = #tpu.pipeline_mode<synchronous>, transform_indices = @transform_9, window_bounds = array<i64: 1, 64>}, {pipeline_mode = #tpu.pipeline_mode<synchronous>, transform_indices = @transform_10, window_bounds = array<i64: 1, 1>}, {transform_indices = @transform_11, window_bounds = array<i64: 8, 1>}]} {
    %c0 = arith.constant 0 : index
    %c0_0 = arith.constant 0 : index
    %0 = vector.load %arg1[%c0, %c0_0] : memref<8x1024xbf16, #tpu.memory_space<vmem>>, vector<8x1024xbf16>
    %c0_1 = arith.constant 0 : index
    %c0_2 = arith.constant 0 : index
    %1 = vector.load %arg2[%c0_1, %c0_2] : memref<1024x512xbf16, #tpu.memory_space<vmem>>, vector<1024x512xbf16>
    %cst = arith.constant dense<0.000000e+00> : vector<8x512xf32>
    %2 = tpu.matmul %0, %1, %cst {dimension_numbers = #tpu.dot_dimension_numbers<[1], [0], [0], [1], [0, 0, 1, 1], [], []>} : vector<8x1024xbf16>, vector<1024x512xbf16>, vector<8x512xf32> -> vector<8x512xf32>
    %c0_3 = arith.constant 0 : index
    %c0_4 = arith.constant 0 : index
    %3 = vector.load %arg3[%c0_3, %c0_4] : memref<1x512xf32, #tpu.memory_space<vmem>>, vector<1x512xf32>
    %4 = vector.broadcast %3 : vector<1x512xf32> to vector<8x512xf32>
    %5 = arith.addf %2, %4 : vector<8x512xf32>
    %cst_5 = arith.constant 2.000000e-01 : f32
    %6 = vector.broadcast %cst_5 : f32 to vector<8x512xf32>
    %7 = arith.mulf %6, %5 : vector<8x512xf32>
    %8 = arith.maximumf %5, %7 : vector<8x512xf32>
    %9 = arith.truncf %8 : vector<8x512xf32> to vector<8x512xbf16>
    %c0_6 = arith.constant 0 : index
    %c0_7 = arith.constant 0 : index
    %10 = vector.load %arg4[%c0_6, %c0_7] : memref<512x256xbf16, #tpu.memory_space<vmem>>, vector<512x256xbf16>
    %cst_8 = arith.constant dense<0.000000e+00> : vector<8x256xf32>
    %11 = tpu.matmul %9, %10, %cst_8 {dimension_numbers = #tpu.dot_dimension_numbers<[1], [0], [0], [1], [0, 0, 1, 1], [], []>} : vector<8x512xbf16>, vector<512x256xbf16>, vector<8x256xf32> -> vector<8x256xf32>
    %c0_9 = arith.constant 0 : index
    %c0_10 = arith.constant 0 : index
    %12 = vector.load %arg5[%c0_9, %c0_10] : memref<1x256xf32, #tpu.memory_space<vmem>>, vector<1x256xf32>
    %13 = vector.broadcast %12 : vector<1x256xf32> to vector<8x256xf32>
    %14 = arith.addf %11, %13 : vector<8x256xf32>
    %cst_11 = arith.constant 2.000000e-01 : f32
    %15 = vector.broadcast %cst_11 : f32 to vector<8x256xf32>
    %16 = arith.mulf %15, %14 : vector<8x256xf32>
    %17 = arith.maximumf %14, %16 : vector<8x256xf32>
    %18 = arith.truncf %17 : vector<8x256xf32> to vector<8x256xbf16>
    %c0_12 = arith.constant 0 : index
    %c0_13 = arith.constant 0 : index
    %19 = vector.load %arg6[%c0_12, %c0_13] : memref<256x128xbf16, #tpu.memory_space<vmem>>, vector<256x128xbf16>
    %cst_14 = arith.constant dense<0.000000e+00> : vector<8x128xf32>
    %20 = tpu.matmul %18, %19, %cst_14 {dimension_numbers = #tpu.dot_dimension_numbers<[1], [0], [0], [1], [0, 0, 1, 1], [], []>} : vector<8x256xbf16>, vector<256x128xbf16>, vector<8x128xf32> -> vector<8x128xf32>
    %c0_15 = arith.constant 0 : index
    %c0_16 = arith.constant 0 : index
    %21 = vector.load %arg7[%c0_15, %c0_16] : memref<1x128xf32, #tpu.memory_space<vmem>>, vector<1x128xf32>
    %22 = vector.broadcast %21 : vector<1x128xf32> to vector<8x128xf32>
    %23 = arith.addf %20, %22 : vector<8x128xf32>
    %cst_17 = arith.constant 2.000000e-01 : f32
    %24 = vector.broadcast %cst_17 : f32 to vector<8x128xf32>
    %25 = arith.mulf %24, %23 : vector<8x128xf32>
    %26 = arith.maximumf %23, %25 : vector<8x128xf32>
    %27 = arith.truncf %26 : vector<8x128xf32> to vector<8x128xbf16>
    %c0_18 = arith.constant 0 : index
    %c0_19 = arith.constant 0 : index
    %28 = vector.load %arg8[%c0_18, %c0_19] : memref<128x64xbf16, #tpu.memory_space<vmem>>, vector<128x64xbf16>
    %cst_20 = arith.constant dense<0.000000e+00> : vector<8x64xf32>
    %29 = tpu.matmul %27, %28, %cst_20 {dimension_numbers = #tpu.dot_dimension_numbers<[1], [0], [0], [1], [0, 0, 1, 1], [], []>} : vector<8x128xbf16>, vector<128x64xbf16>, vector<8x64xf32> -> vector<8x64xf32>
    %c0_21 = arith.constant 0 : index
    %c0_22 = arith.constant 0 : index
    %30 = vector.load %arg9[%c0_21, %c0_22] : memref<1x64xf32, #tpu.memory_space<vmem>>, vector<1x64xf32>
    %31 = vector.broadcast %30 : vector<1x64xf32> to vector<8x64xf32>
    %32 = arith.addf %29, %31 : vector<8x64xf32>
    %cst_23 = arith.constant 2.000000e-01 : f32
    %33 = vector.broadcast %cst_23 : f32 to vector<8x64xf32>
    %34 = arith.mulf %33, %32 : vector<8x64xf32>
    %35 = arith.maximumf %32, %34 : vector<8x64xf32>
    %c0_24 = arith.constant 0 : index
    %c0_25 = arith.constant 0 : index
    %36 = vector.load %arg10[%c0_24, %c0_25] : memref<1x64xbf16, #tpu.memory_space<vmem>>, vector<1x64xbf16>
    %37 = arith.extf %36 : vector<1x64xbf16> to vector<1x64xf32>
    %38 = vector.broadcast %37 : vector<1x64xf32> to vector<8x64xf32>
    %39 = arith.mulf %35, %38 : vector<8x64xf32>
    %cst_26 = arith.constant dense<0.000000e+00> : vector<8xf32>
    %40 = vector.multi_reduction <add>, %39, %cst_26 [1] : vector<8x64xf32> to vector<8xf32>
    %41 = vector.shape_cast %40 : vector<8xf32> to vector<8x1xf32>
    %c0_27 = arith.constant 0 : index
    %c0_28 = arith.constant 0 : index
    %42 = vector.load %arg11[%c0_27, %c0_28] : memref<1x1xf32, #tpu.memory_space<vmem>>, vector<1x1xf32>
    %43 = vector.broadcast %42 : vector<1x1xf32> to vector<8x1xf32>
    %44 = arith.addf %41, %43 : vector<8x1xf32>
    %c0_29 = arith.constant 0 : index
    %c0_30 = arith.constant 0 : index
    %45 = vector.load %arg12[%c0_29, %c0_30] : memref<8x1xf32, #tpu.memory_space<vmem>>, vector<8x1xf32>
    tpu.vector_store %arg12[%c0_29, %c0_30], %44 {strides = array<i32>} : memref<8x1xf32, #tpu.memory_space<vmem>>, vector<8x1xf32>,
    return
  }
  func.func @transform_0(%arg0: i32) -> (i32, i32) {
    %c0_i32 = arith.constant 0 : i32
    %c0_i32_0 = arith.constant 0 : i32
    return %arg0, %c0_i32 : i32, i32
  }
  func.func @transform_1(%arg0: i32) -> (i32, i32) {
    %c0_i32 = arith.constant 0 : i32
    %c0_i32_0 = arith.constant 0 : i32
    %c0_i32_1 = arith.constant 0 : i32
    return %c0_i32, %c0_i32_0 : i32, i32
  }
  func.func @transform_2(%arg0: i32) -> (i32, i32) {
    %c0_i32 = arith.constant 0 : i32
    %c0_i32_0 = arith.constant 0 : i32
    %c0_i32_1 = arith.constant 0 : i32
    return %c0_i32, %c0_i32_0 : i32, i32
  }
  func.func @transform_3(%arg0: i32) -> (i32, i32) {
    %c0_i32 = arith.constant 0 : i32
    %c0_i32_0 = arith.constant 0 : i32
    %c0_i32_1 = arith.constant 0 : i32
    return %c0_i32, %c0_i32_0 : i32, i32
  }
  func.func @transform_4(%arg0: i32) -> (i32, i32) {
    %c0_i32 = arith.constant 0 : i32
    %c0_i32_0 = arith.constant 0 : i32
    %c0_i32_1 = arith.constant 0 : i32
    return %c0_i32, %c0_i32_0 : i32, i32
  }
  func.func @transform_5(%arg0: i32) -> (i32, i32) {
    %c0_i32 = arith.constant 0 : i32
    %c0_i32_0 = arith.constant 0 : i32
    %c0_i32_1 = arith.constant 0 : i32
    return %c0_i32, %c0_i32_0 : i32, i32
  }
  func.func @transform_6(%arg0: i32) -> (i32, i32) {
    %c0_i32 = arith.constant 0 : i32
    %c0_i32_0 = arith.constant 0 : i32
    %c0_i32_1 = arith.constant 0 : i32
    return %c0_i32, %c0_i32_0 : i32, i32
  }
  func.func @transform_7(%arg0: i32) -> (i32, i32) {
    %c0_i32 = arith.constant 0 : i32
    %c0_i32_0 = arith.constant 0 : i32
    %c0_i32_1 = arith.constant 0 : i32
    return %c0_i32, %c0_i32_0 : i32, i32
  }
  func.func @transform_8(%arg0: i32) -> (i32, i32) {
    %c0_i32 = arith.constant 0 : i32
    %c0_i32_0 = arith.constant 0 : i32
    %c0_i32_1 = arith.constant 0 : i32
    return %c0_i32, %c0_i32_0 : i32, i32
  }
  func.func @transform_9(%arg0: i32) -> (i32, i32) {
    %c0_i32 = arith.constant 0 : i32
    %c0_i32_0 = arith.constant 0 : i32
    %c0_i32_1 = arith.constant 0 : i32
    return %c0_i32, %c0_i32_0 : i32, i32
  }
  func.func @transform_10(%arg0: i32) -> (i32, i32) {
    %c0_i32 = arith.constant 0 : i32
    %c0_i32_0 = arith.constant 0 : i32
    %c0_i32_1 = arith.constant 0 : i32
    return %c0_i32, %c0_i32_0 : i32, i32
  }
  func.func @transform_11(%arg0: i32) -> (i32, i32) {
    %c0_i32 = arith.constant 0 : i32
    %c0_i32_0 = arith.constant 0 : i32
    return %arg0, %c0_i32 : i32, i32
  }
}

</mosaic_0001>

<bundles_post_ra>
// kernel: discriminator_forward.1
= control target key start
LH: loop header
LB: loop body
LE: loop exit
PB: predicated region body
PF: predicated region fallthrough
CT: control target
= control target key end

     0   :  { %s4048_s0 = inlined_call_operand.vmem [shape: bf16[8,1024], index: 0, kind: input, shape index: {}]   ;;  %s4049_s1 = inlined_call_operand.hbm [shape: bf16[1024,512], index: 1, kind: input, shape index: {}]   ;;  %s4050_s2 = inlined_call_operand.vmem [shape: f32[1,512], index: 2, kind: input, shape index: {}]   ;;  %s4051_s3 = inlined_call_operand.hbm [shape: bf16[512,256], index: 3, kind: input, shape index: {}]   ;;  %s4052_s4 = inlined_call_operand.vmem [shape: f32[1,256], index: 4, kind: input, shape index: {}]   ;;  %s4053_s5 = inlined_call_operand.vmem [shape: bf16[256,128], index: 5, kind: input, shape index: {}]   ;;  %s4054_s6 = inlined_call_operand.vmem [shape: f32[1,128], index: 6, kind: input, shape index: {}]   ;;  %s4055_s7 = inlined_call_operand.vmem [shape: bf16[128,64], index: 7, kind: input, shape index: {}]   ;;  %s4056_s8 = inlined_call_operand.vmem [shape: f32[1,64], index: 8, kind: input, shape index: {}]   ;;  %s4057_s9 = inlined_call_operand.vmem [shape: bf16[1,64], index: 9, kind: input, shape index: {}]   ;;  %s4058_s10 = inlined_call_operand.<no memory space> [shape: f32[1,1], index: 10, kind: input, shape index: {}]   ;;  %s4059_s11 = inlined_call_operand.vmem [shape: f32[8,1], index: 11, kind: output, shape index: {}]  }
   0x1   :  { %v16_v0 = vstv %s4058_s10 }
   0x2   :  { %17 = vst [vmem:[#allocation2] sm:$0x1] %v16_v0 }
   0x3   :  { %18 = vsyncpa [#allocation4], 0 }
   0x4   :  { %19 = vsyncpa [#allocation6], 0  ;;  %s3809_s19 = smov [#allocation3]   ;;  %s3761_s23 = scalar_lea.hbm %s4049_s1, 32768 }
   0x5   :  { %s27_s20 = sshll.u32 %s3809_s19, 4  ;;  %p3762_p0 = scmp.ne.s32.totalorder %s4049_s1, %s3761_s23  ;;  %s28_s20 = int_to_ptr.vmem [resolvable:$true] %s27_s20 }
   0x6   :  { %p3765_p1 = scmp.lt.u32.totalorder %s3761_s23, %s4049_s1 }
   0x8   :  { %p3767_p2 = pnand %p3765_p1, %p3762_p0 }
   0xa   :  { %3770 = shalt.err (!%p3767_p2)
}
   0xb   :  { %s3771_s10 = scalar_lea.vmem %s28_s20, 32768  ;;  %p3776_p4 = scmp.lt.s32.totalorder %s28_s20, %s28_s20 }
   0xc   :  { %p3772_p3 = scmp.ne.s32.totalorder %s28_s20, %s3771_s10  ;;  %p3777_p5 = scmp.lt.s32.totalorder %s3771_s10, %s3771_s10 }
   0xe   :  { %p3778_p6 = por %p3777_p5, %p3776_p4 }
  0x10   :  { %p3779_p7 = pnand %p3778_p6, %p3772_p3 }
  0x12   :  { %3782 = shalt.err (!%p3779_p7)
}
  0x13   :  { %s3810_s28 = smov 256   ;;  %s3811_s29 = smov 16  }
  0x14   :  { %33 = dma.hbm_to_vmem [thread:$0]  %s4049_s1, 32768, %s28_s20, [#allocation4], %s3810_s28, %s3810_s28, %s3811_s29  }
  0x15   :  { %s3812_s13 = smov [#allocation5]   ;;  %s3783_s17 = scalar_lea.hbm %s4051_s3, 8192 }
  0x16   :  { %s41_s14 = sshll.u32 %s3812_s13, 4  ;;  %p3784_p8 = scmp.ne.s32.totalorder %s4051_s3, %s3783_s17  ;;  %s42_s14 = int_to_ptr.vmem [resolvable:$true] %s41_s14 }
  0x17   :  { %p3787_p9 = scmp.lt.u32.totalorder %s3783_s17, %s4051_s3 }
  0x19   :  { %p3789_p10 = pnand %p3787_p9, %p3784_p8 }
  0x1b   :  { %3792 = shalt.err (!%p3789_p10)
}
  0x1c   :  { %s3793_s23 = scalar_lea.vmem %s42_s14, 8192  ;;  %p3798_p12 = scmp.lt.s32.totalorder %s42_s14, %s42_s14 }
  0x1d   :  { %p3794_p11 = scmp.ne.s32.totalorder %s42_s14, %s3793_s23  ;;  %p3799_p13 = scmp.lt.s32.totalorder %s3793_s23, %s3793_s23 }
  0x1f   :  { %p3800_p0 = por %p3799_p13, %p3798_p12 }
  0x21   :  { %p3801_p1 = pnand %p3800_p0, %p3794_p11 }
  0x23   :  { %3804 = shalt.err (!%p3801_p1)
}
  0x24   :  { %s3813_s1 = smov 128   ;;  %s3814_s20 = smov 8  }
  0x25   :  { %47 = dma.hbm_to_vmem [thread:$0]  %s4051_s3, 8192, %s42_s14, [#allocation6], %s3813_s1, %s3813_s1, %s3814_s20  }
  0x26   :  { %3805 = dma.done.wait [#allocation4], 32768  }
  0x27   :  { %3806 = vsyncadd [#allocation4], 4294934528 }
  0x28   :  { %3807 = dma.done.wait [#allocation6], 8192  }
  0x29   :  { %3808 = vsyncadd [#allocation6], 4294959104  ;;  %v3249_v1 = vld [vmem:[#allocation3 + $0x4] ss:$16 sps:$4 sm:$0xff]   ;;  %v3251_v2 = vld [vmem:[#allocation3 + $0xc] ss:$16 sps:$4 sm:$0xff]  }
  0x2a   :  { %1659 = vmatprep.subr.bf16.mxu0 %v3249_v1  ;;  %v3253_v3 = vld [vmem:[#allocation3] ss:$16 sps:$4 sm:$0xff]   ;;  %v3254_v4 = vld [vmem:[#allocation3 + $0x8] ss:$16 sps:$4 sm:$0xff]   ;;  %1823 = vmatprep.subr.bf16.mxu1 %v3251_v2  ;;  %v3255_v5 = vld [vmem:[#allocation3 + $0x24] ss:$16 sps:$4 sm:$0xff]  }
  0x2b   :  { %1660 = vmatpush1.bf16.msra.mxu0 %v3253_v3  ;;  %1824 = vmatpush1.bf16.msra.mxu1 %v3254_v4  ;;  %v3257_v6 = vld [vmem:[#allocation3 + $0x2c] ss:$16 sps:$4 sm:$0xff]   ;;  %v3259_v7 = vld [vmem:[#allocation3 + $0x20] ss:$16 sps:$4 sm:$0xff]   ;;  %v3260_v8 = vld [vmem:[#allocation3 + $0x28] ss:$16 sps:$4 sm:$0xff]  }
  0x2c   :  { %1661 = vmatprep.subr.bf16.mxu0 %v3255_v5  ;;  %1825 = vmatprep.subr.bf16.mxu1 %v3257_v6  ;;  %v3261_v9 = vld [vmem:[#allocation3 + $0x44] ss:$16 sps:$4 sm:$0xff]   ;;  %v3263_v10 = vld [vmem:[#allocation3 + $0x4c] ss:$16 sps:$4 sm:$0xff]   ;;  %v3265_v11 = vld [vmem:[#allocation3 + $0x40] ss:$16 sps:$4 sm:$0xff]  }
  0x2d   :  { %v3266_v12 = vld [vmem:[#allocation3 + $0x48] ss:$16 sps:$4 sm:$0xff]   ;;  %v3267_v13 = vld [vmem:[#allocation3 + $0x64] ss:$16 sps:$4 sm:$0xff]   ;;  %v3269_v14 = vld [vmem:[#allocation3 + $0x6c] ss:$16 sps:$4 sm:$0xff]  }
  0x2e   :  { %v3271_v15 = vld [vmem:[#allocation3 + $0x60] ss:$16 sps:$4 sm:$0xff]   ;;  %v3272_v16 = vld [vmem:[#allocation3 + $0x68] ss:$16 sps:$4 sm:$0xff]   ;;  %v3273_v17 = vld [vmem:[#allocation3 + $0x84] ss:$16 sps:$4 sm:$0xff]  }
  0x2f   :  { %1662 = vmatpush1.bf16.msra.mxu0 %v3259_v7  ;;  %1826 = vmatpush1.bf16.msra.mxu1 %v3260_v8  ;;  %v3275_v18 = vld [vmem:[#allocation3 + $0x8c] ss:$16 sps:$4 sm:$0xff]   ;;  %v3277_v19 = vld [vmem:[#allocation3 + $0x80] ss:$16 sps:$4 sm:$0xff]   ;;  %v3278_v20 = vld [vmem:[#allocation3 + $0x88] ss:$16 sps:$4 sm:$0xff]  }
  0x30   :  { %1663 = vmatprep.subr.bf16.mxu0 %v3261_v9  ;;  %1827 = vmatprep.subr.bf16.mxu1 %v3263_v10  ;;  %v3279_v21 = vld [vmem:[#allocation3 + $0xa4] ss:$16 sps:$4 sm:$0xff]   ;;  %v3281_v22 = vld [vmem:[#allocation3 + $0xac] ss:$16 sps:$4 sm:$0xff]   ;;  %v3283_v23 = vld [vmem:[#allocation3 + $0xa0] ss:$16 sps:$4 sm:$0xff]  }
  0x31   :  { %v3284_v24 = vld [vmem:[#allocation3 + $0xa8] ss:$16 sps:$4 sm:$0xff]   ;;  %v3285_v25 = vld [vmem:[#allocation3 + $0xc4] ss:$16 sps:$4 sm:$0xff]   ;;  %v3287_v26 = vld [vmem:[#allocation3 + $0xcc] ss:$16 sps:$4 sm:$0xff]  }
  0x32   :  { %v3289_v27 = vld [vmem:[#allocation3 + $0xc0] ss:$16 sps:$4 sm:$0xff]   ;;  %v3290_v28 = vld [vmem:[#allocation3 + $0xc8] ss:$16 sps:$4 sm:$0xff]   ;;  %v3291_v29 = vld [vmem:[#allocation3 + $0xe4] ss:$16 sps:$4 sm:$0xff]  }
  0x33   :  { %1664 = vmatpush1.bf16.msra.mxu0 %v3265_v11  ;;  %1828 = vmatpush1.bf16.msra.mxu1 %v3266_v12  ;;  %v3293_v30 = vld [vmem:[#allocation3 + $0xec] ss:$16 sps:$4 sm:$0xff]   ;;  %v3295_v31 = vld [vmem:[#allocation3 + $0xe0] ss:$16 sps:$4 sm:$0xff]   ;;  %v3296_v32 = vld [vmem:[#allocation3 + $0xe8] ss:$16 sps:$4 sm:$0xff]  }
  0x34   :  { %1665 = vmatprep.subr.bf16.mxu0 %v3267_v13  ;;  %1829 = vmatprep.subr.bf16.mxu1 %v3269_v14  ;;  %v3297_v33 = vld [vmem:[#allocation3 + $0x104] ss:$16 sps:$4 sm:$0xff]   ;;  %v3299_v34 = vld [vmem:[#allocation3 + $0x10c] ss:$16 sps:$4 sm:$0xff]   ;;  %v3301_v35 = vld [vmem:[#allocation3 + $0x100] ss:$16 sps:$4 sm:$0xff]  }
  0x35   :  { %v3302_v36 = vld [vmem:[#allocation3 + $0x108] ss:$16 sps:$4 sm:$0xff]   ;;  %v3303_v37 = vld [vmem:[#allocation3 + $0x124] ss:$16 sps:$4 sm:$0xff]   ;;  %v3305_v38 = vld [vmem:[#allocation3 + $0x12c] ss:$16 sps:$4 sm:$0xff]  }
  0x36   :  { %v3307_v39 = vld [vmem:[#allocation3 + $0x120] ss:$16 sps:$4 sm:$0xff]   ;;  %v3308_v40 = vld [vmem:[#allocation3 + $0x128] ss:$16 sps:$4 sm:$0xff]   ;;  %v3309_v41 = vld [vmem:[#allocation3 + $0x144] ss:$16 sps:$4 sm:$0xff]  }
  0x37   :  { %1666 = vmatpush1.bf16.msra.mxu0 %v3271_v15  ;;  %1830 = vmatpush1.bf16.msra.mxu1 %v3272_v16  ;;  %v3311_v42 = vld [vmem:[#allocation3 + $0x14c] ss:$16 sps:$4 sm:$0xff]   ;;  %v3313_v43 = vld [vmem:[#allocation3 + $0x140] ss:$16 sps:$4 sm:$0xff]   ;;  %v3314_v44 = vld [vmem:[#allocation3 + $0x148] ss:$16 sps:$4 sm:$0xff]  }
  0x38   :  { %1667 = vmatprep.subr.bf16.mxu0 %v3273_v17  ;;  %1831 = vmatprep.subr.bf16.mxu1 %v3275_v18  ;;  %v3315_v45 = vld [vmem:[#allocation3 + $0x164] ss:$16 sps:$4 sm:$0xff]   ;;  %v3317_v46 = vld [vmem:[#allocation3 + $0x16c] ss:$16 sps:$4 sm:$0xff]   ;;  %v3319_v48 = vld [vmem:[#allocation3 + $0x160] ss:$16 sps:$4 sm:$0xff]  }
  0x39   :  { %v69_v47 = vld [vmem:[%s4048_s0] sm:$0xff]  ;;  %v3320_v50 = vld [vmem:[#allocation3 + $0x168] ss:$16 sps:$4 sm:$0xff]   ;;  %vm3816_vm0 = vmmov 0   ;;  %vm2781_vm1 = vcmask 523264   ;;  %vm2793_vm2 = vcmask 7168  }
  0x3a   :  { %v2802_v49 = vcombine.high %v69_v47, %v69_v47  ;;  %v3321_v51 = vld [vmem:[#allocation3 + $0x184] ss:$16 sps:$4 sm:$0xff]   ;;  %v3323_v52 = vld [vmem:[#allocation3 + $0x18c] ss:$16 sps:$4 sm:$0xff]   ;;  %v3325_v53 = vld [vmem:[#allocation3 + $0x180] ss:$16 sps:$4 sm:$0xff]   ;;  %v2801_v5 = vcombine.low %v69_v47, %v69_v47 }
  0x3b   :  { %1668 = vmatpush1.bf16.msra.mxu0 %v3277_v19  ;;  %1832 = vmatpush1.bf16.msra.mxu1 %v3278_v20  ;;  %v3326_v54 = vld [vmem:[#allocation3 + $0x188] ss:$16 sps:$4 sm:$0xff]   ;;  %v3327_v55 = vld [vmem:[#allocation3 + $0x1a4] ss:$16 sps:$4 sm:$0xff]   ;;  %v3329_v56 = vld [vmem:[#allocation3 + $0x1ac] ss:$16 sps:$4 sm:$0xff]  }
  0x3c   :  { %1669 = vmatprep.subr.bf16.mxu0 %v3279_v21  ;;  %1833 = vmatprep.subr.bf16.mxu1 %v3281_v22  ;;  %v3331_v57 = vld [vmem:[#allocation3 + $0x1a0] ss:$16 sps:$4 sm:$0xff]   ;;  %v3332_v58 = vld [vmem:[#allocation3 + $0x1a8] ss:$16 sps:$4 sm:$0xff]   ;;  %v3333_v59 = vld [vmem:[#allocation3 + $0x1c4] ss:$16 sps:$4 sm:$0xff]  }
  0x3d   :  { %1691 = vmatprep.mubr.bf16.mxu0 %v2802_v49  ;;  %1855 = vmatprep.mubr.bf16.mxu1 %v2802_v49  ;;  %v3335_v60 = vld [vmem:[#allocation3 + $0x1cc] ss:$16 sps:$4 sm:$0xff]   ;;  %v3337_v61 = vld [vmem:[#allocation3 + $0x1c0] ss:$16 sps:$4 sm:$0xff]   ;;  %v3338_v62 = vld [vmem:[#allocation3 + $0x1c8] ss:$16 sps:$4 sm:$0xff]  }
  0x3e   :  { %v3339_v63 = vld [vmem:[#allocation3 + $0x1e4] ss:$16 sps:$4 sm:$0xff]   ;;  %v3341_v0 = vld [vmem:[#allocation3 + $0x1ec] ss:$16 sps:$4 sm:$0xff]   ;;  %v3343_v1 = vld [vmem:[#allocation3 + $0x1e0] ss:$16 sps:$4 sm:$0xff]  }
  0x3f   :  { %1670 = vmatpush1.bf16.msra.mxu0 %v3283_v23  ;;  %1834 = vmatpush1.bf16.msra.mxu1 %v3284_v24  ;;  %v3344_v2 = vld [vmem:[#allocation3 + $0x1e8] ss:$16 sps:$4 sm:$0xff]   ;;  %v3349_v3 = vld [vmem:[#allocation3 + $0x204] ss:$16 sps:$4 sm:$0xff]   ;;  %v3352_v4 = vld [vmem:[#allocation3 + $0x20c] ss:$16 sps:$4 sm:$0xff]  }
  0x40   :  { %1671 = vmatprep.subr.bf16.mxu0 %v3285_v25  ;;  %1835 = vmatprep.subr.bf16.mxu1 %v3287_v26  ;;  %v3347_v6 = vld [vmem:[#allocation3 + $0x200] ss:$16 sps:$4 sm:$0xff]   ;;  %v3350_v7 = vld [vmem:[#allocation3 + $0x208] ss:$16 sps:$4 sm:$0xff]   ;;  %v3355_v8 = vld [vmem:[#allocation3 + $0x224] ss:$16 sps:$4 sm:$0xff]  }
  0x41   :  { %v3358_v9 = vld [vmem:[#allocation3 + $0x22c] ss:$16 sps:$4 sm:$0xff]   ;;  %v3353_v10 = vld [vmem:[#allocation3 + $0x220] ss:$16 sps:$4 sm:$0xff]   ;;  %v3356_v11 = vld [vmem:[#allocation3 + $0x228] ss:$16 sps:$4 sm:$0xff]  }
  0x42   :  { %v3361_v12 = vld [vmem:[#allocation3 + $0x244] ss:$16 sps:$4 sm:$0xff]   ;;  %v3364_v13 = vld [vmem:[#allocation3 + $0x24c] ss:$16 sps:$4 sm:$0xff]   ;;  %v3359_v14 = vld [vmem:[#allocation3 + $0x240] ss:$16 sps:$4 sm:$0xff]  }
  0x43   :  { %1672 = vmatpush1.bf16.msra.mxu0 %v3289_v27  ;;  %1836 = vmatpush1.bf16.msra.mxu1 %v3290_v28  ;;  %v3362_v15 = vld [vmem:[#allocation3 + $0x248] ss:$16 sps:$4 sm:$0xff]   ;;  %v3367_v16 = vld [vmem:[#allocation3 + $0x264] ss:$16 sps:$4 sm:$0xff]   ;;  %v3370_v17 = vld [vmem:[#allocation3 + $0x26c] ss:$16 sps:$4 sm:$0xff]  }
  0x44   :  { %1673 = vmatprep.subr.bf16.mxu0 %v3291_v29  ;;  %1837 = vmatprep.subr.bf16.mxu1 %v3293_v30  ;;  %v3365_v18 = vld [vmem:[#allocation3 + $0x260] ss:$16 sps:$4 sm:$0xff]   ;;  %v3368_v19 = vld [vmem:[#allocation3 + $0x268] ss:$16 sps:$4 sm:$0xff]   ;;  %v3373_v20 = vld [vmem:[#allocation3 + $0x284] ss:$16 sps:$4 sm:$0xff]  }
  0x45   :  { %v3376_v21 = vld [vmem:[#allocation3 + $0x28c] ss:$16 sps:$4 sm:$0xff]   ;;  %v3371_v22 = vld [vmem:[#allocation3 + $0x280] ss:$16 sps:$4 sm:$0xff]   ;;  %v3374_v23 = vld [vmem:[#allocation3 + $0x288] ss:$16 sps:$4 sm:$0xff]  }
  0x46   :  { %v3379_v24 = vld [vmem:[#allocation3 + $0x2a4] ss:$16 sps:$4 sm:$0xff]   ;;  %v3382_v25 = vld [vmem:[#allocation3 + $0x2ac] ss:$16 sps:$4 sm:$0xff]   ;;  %v3377_v26 = vld [vmem:[#allocation3 + $0x2a0] ss:$16 sps:$4 sm:$0xff]  }
  0x47   :  { %1674 = vmatpush1.bf16.msra.mxu0 %v3295_v31  ;;  %1838 = vmatpush1.bf16.msra.mxu1 %v3296_v32  ;;  %v3380_v27 = vld [vmem:[#allocation3 + $0x2a8] ss:$16 sps:$4 sm:$0xff]   ;;  %v3385_v28 = vld [vmem:[#allocation3 + $0x2c4] ss:$16 sps:$4 sm:$0xff]   ;;  %v3388_v29 = vld [vmem:[#allocation3 + $0x2cc] ss:$16 sps:$4 sm:$0xff]  }
  0x48   :  { %1675 = vmatprep.subr.bf16.mxu0 %v3297_v33  ;;  %1839 = vmatprep.subr.bf16.mxu1 %v3299_v34  ;;  %v3910_v30 = vld [vmem:[%s4048_s0 + $0x8] sm:$0xff]  ;;  %v3383_v32 = vld [vmem:[#allocation3 + $0x2c0] ss:$16 sps:$4 sm:$0xff]  }
  0x49   :  { %v2804_v31 = vcombine.high %v3910_v30, %v3910_v30  ;;  %v3386_v33 = vld [vmem:[#allocation3 + $0x2c8] ss:$16 sps:$4 sm:$0xff]   ;;  %v3391_v34 = vld [vmem:[#allocation3 + $0x2e4] ss:$16 sps:$4 sm:$0xff]   ;;  %v3412_v47 = vld [vmem:[#allocation3 + $0x34c] ss:$16 sps:$4 sm:$0xff]  }
  0x4a   :  { %v3410_v49 = vld [vmem:[#allocation3 + $0x348] ss:$16 sps:$4 sm:$0xff]  }
  0x4b   :  { %1676 = vmatpush1.bf16.msra.mxu0 %v3301_v35  ;;  %1840 = vmatpush1.bf16.msra.mxu1 %v3302_v36  ;;  %v3394_v35 = vld [vmem:[#allocation3 + $0x2ec] ss:$16 sps:$4 sm:$0xff]   ;;  %v3389_v36 = vld [vmem:[#allocation3 + $0x2e0] ss:$16 sps:$4 sm:$0xff]  }
  0x4c   :  { %1677 = vmatprep.subr.bf16.mxu0 %v3303_v37  ;;  %1841 = vmatprep.subr.bf16.mxu1 %v3305_v38  ;;  %v3392_v37 = vld [vmem:[#allocation3 + $0x2e8] ss:$16 sps:$4 sm:$0xff]   ;;  %v3397_v38 = vld [vmem:[#allocation3 + $0x304] ss:$16 sps:$4 sm:$0xff]  }
  0x4f   :  { %1678 = vmatpush1.bf16.msra.mxu0 %v3307_v39  ;;  %1842 = vmatpush1.bf16.msra.mxu1 %v3308_v40  ;;  %v3400_v39 = vld [vmem:[#allocation3 + $0x30c] ss:$16 sps:$4 sm:$0xff]   ;;  %v3395_v40 = vld [vmem:[#allocation3 + $0x300] ss:$16 sps:$4 sm:$0xff]  }
  0x50   :  { %1679 = vmatprep.subr.bf16.mxu0 %v3309_v41  ;;  %1843 = vmatprep.subr.bf16.mxu1 %v3311_v42  ;;  %v3398_v41 = vld [vmem:[#allocation3 + $0x308] ss:$16 sps:$4 sm:$0xff]   ;;  %v3403_v42 = vld [vmem:[#allocation3 + $0x324] ss:$16 sps:$4 sm:$0xff]  }
  0x53   :  { %1680 = vmatpush1.bf16.msra.mxu0 %v3313_v43  ;;  %1844 = vmatpush1.bf16.msra.mxu1 %v3314_v44  ;;  %v3406_v43 = vld [vmem:[#allocation3 + $0x32c] ss:$16 sps:$4 sm:$0xff]   ;;  %v3401_v44 = vld [vmem:[#allocation3 + $0x320] ss:$16 sps:$4 sm:$0xff]  }
  0x54   :  { %1681 = vmatprep.subr.bf16.mxu0 %v3315_v45  ;;  %1845 = vmatprep.subr.bf16.mxu1 %v3317_v46  ;;  %v3404_v45 = vld [vmem:[#allocation3 + $0x328] ss:$16 sps:$4 sm:$0xff]   ;;  %v3409_v46 = vld [vmem:[#allocation3 + $0x344] ss:$16 sps:$4 sm:$0xff]  }
  0x57   :  { %1682 = vmatpush1.bf16.msra.mxu0 %v3319_v48  ;;  %1846 = vmatpush1.bf16.msra.mxu1 %v3320_v50  ;;  %v3407_v48 = vld [vmem:[#allocation3 + $0x340] ss:$16 sps:$4 sm:$0xff]   ;;  %v3415_v50 = vld [vmem:[#allocation3 + $0x364] ss:$16 sps:$4 sm:$0xff]  }
  0x58   :  { %1683 = vmatprep.subr.bf16.mxu0 %v3321_v51  ;;  %1847 = vmatprep.subr.bf16.mxu1 %v3323_v52  ;;  %v3418_v51 = vld [vmem:[#allocation3 + $0x36c] ss:$16 sps:$4 sm:$0xff]   ;;  %v3413_v52 = vld [vmem:[#allocation3 + $0x360] ss:$16 sps:$4 sm:$0xff]  }
  0x5b   :  { %1684 = vmatpush1.bf16.msra.mxu0 %v3325_v53  ;;  %1848 = vmatpush1.bf16.msra.mxu1 %v3326_v54  ;;  %v3416_v53 = vld [vmem:[#allocation3 + $0x368] ss:$16 sps:$4 sm:$0xff]   ;;  %v3421_v54 = vld [vmem:[#allocation3 + $0x384] ss:$16 sps:$4 sm:$0xff]  }
  0x5c   :  { %1685 = vmatprep.subr.bf16.mxu0 %v3327_v55  ;;  %1849 = vmatprep.subr.bf16.mxu1 %v3329_v56  ;;  %v3424_v55 = vld [vmem:[#allocation3 + $0x38c] ss:$16 sps:$4 sm:$0xff]   ;;  %v3419_v56 = vld [vmem:[#allocation3 + $0x380] ss:$16 sps:$4 sm:$0xff]  }
  0x5f   :  { %1686 = vmatpush1.bf16.msra.mxu0 %v3331_v57  ;;  %1850 = vmatpush1.bf16.msra.mxu1 %v3332_v58  ;;  %v3422_v57 = vld [vmem:[#allocation3 + $0x388] ss:$16 sps:$4 sm:$0xff]   ;;  %v3427_v58 = vld [vmem:[#allocation3 + $0x3a4] ss:$16 sps:$4 sm:$0xff]  }
  0x60   :  { %1687 = vmatprep.subr.bf16.mxu0 %v3333_v59  ;;  %1851 = vmatprep.subr.bf16.mxu1 %v3335_v60  ;;  %v3430_v59 = vld [vmem:[#allocation3 + $0x3ac] ss:$16 sps:$4 sm:$0xff]   ;;  %v3425_v60 = vld [vmem:[#allocation3 + $0x3a0] ss:$16 sps:$4 sm:$0xff]  }
  0x63   :  { %1688 = vmatpush1.bf16.msra.mxu0 %v3337_v61  ;;  %1852 = vmatpush1.bf16.msra.mxu1 %v3338_v62  ;;  %v3428_v61 = vld [vmem:[#allocation3 + $0x3a8] ss:$16 sps:$4 sm:$0xff]   ;;  %v3433_v62 = vld [vmem:[#allocation3 + $0x3c4] ss:$16 sps:$4 sm:$0xff]  }
  0x64   :  { %1689 = vmatprep.subr.bf16.mxu0 %v3339_v63  ;;  %1853 = vmatprep.subr.bf16.mxu1 %v3341_v0  ;;  %v3436_v63 = vld [vmem:[#allocation3 + $0x3cc] ss:$16 sps:$4 sm:$0xff]   ;;  %v3431_v0 = vld [vmem:[#allocation3 + $0x3c0] ss:$16 sps:$4 sm:$0xff]  }
  0x67   :  { %1690 = vmatpush1.bf16.msra.mxu0 %v3343_v1  ;;  %1854 = vmatpush1.bf16.msra.mxu1 %v3344_v2  ;;  %v3434_v1 = vld [vmem:[#allocation3 + $0x3c8] ss:$16 sps:$4 sm:$0xff]   ;;  %v3439_v2 = vld [vmem:[#allocation3 + $0x3e4] ss:$16 sps:$4 sm:$0xff]  }
  0x68   :  { %1700 = vmatprep.subr.bf16.mxu0 %v3349_v3  ;;  %1864 = vmatprep.subr.bf16.mxu1 %v3352_v4  ;;  %v3442_v3 = vld [vmem:[#allocation3 + $0x3ec] ss:$16 sps:$4 sm:$0xff]   ;;  %v3437_v4 = vld [vmem:[#allocation3 + $0x3e0] ss:$16 sps:$4 sm:$0xff]  }
  0x6a   :  { %1692 = vmatmul.mubr.bf16.vlgmr.msra.gmra.mrb[0].mxu0 %v2801_v5  ;;  %1856 = vmatmul.mubr.bf16.vlgmr.msra.gmra.mrb[0].mxu1 %v2801_v5  ;;  %v3440_v5 = vld [vmem:[#allocation3 + $0x3e8] ss:$16 sps:$4 sm:$0xff]  }
  0x6b   :  { %1701 = vmatpush1.bf16.msra.mxu0 %v3347_v6  ;;  %1865 = vmatpush1.bf16.msra.mxu1 %v3350_v7  ;;  %v3447_v6 = vld [vmem:[#allocation3 + $0x404] ss:$16 sps:$4 sm:$0xff]   ;;  %v3450_v7 = vld [vmem:[#allocation3 + $0x40c] ss:$16 sps:$4 sm:$0xff]  }
  0x6c   :  { %1702 = vmatprep.subr.bf16.mxu0 %v3355_v8  ;;  %1866 = vmatprep.subr.bf16.mxu1 %v3358_v9  ;;  %v2803_v8 = vcombine.low %v3910_v30, %v3910_v30  ;;  %v3445_v9 = vld [vmem:[#allocation3 + $0x400] ss:$16 sps:$4 sm:$0xff]   ;;  %v3480_v30 = vld [vmem:[#allocation3 + $0x4ac] ss:$16 sps:$4 sm:$0xff]  }
  0x6d   :  { %1732 = vmatprep.mubr.bf16.mxu0 %v2804_v31  ;;  %1896 = vmatprep.mubr.bf16.mxu1 %v2804_v31  ;;  %v3475_v31 = vld [vmem:[#allocation3 + $0x4a0] ss:$16 sps:$4 sm:$0xff]  }
  0x6f   :  { %1703 = vmatpush1.bf16.msra.mxu0 %v3353_v10  ;;  %1867 = vmatpush1.bf16.msra.mxu1 %v3356_v11  ;;  %v3448_v10 = vld [vmem:[#allocation3 + $0x408] ss:$16 sps:$4 sm:$0xff]   ;;  %v3453_v11 = vld [vmem:[#allocation3 + $0x424] ss:$16 sps:$4 sm:$0xff]  }
  0x70   :  { %1704 = vmatprep.subr.bf16.mxu0 %v3361_v12  ;;  %1868 = vmatprep.subr.bf16.mxu1 %v3364_v13  ;;  %v3919_v12 = vld [vmem:[%s4048_s0 + $0x10] sm:$0xff] }
  0x71   :  { %v3456_v13 = vld [vmem:[#allocation3 + $0x42c] ss:$16 sps:$4 sm:$0xff]  }
  0x73   :  { %1705 = vmatpush1.bf16.msra.mxu0 %v3359_v14  ;;  %1869 = vmatpush1.bf16.msra.mxu1 %v3362_v15  ;;  %v2806_v14 = vcombine.high %v3919_v12, %v3919_v12  ;;  %v3451_v15 = vld [vmem:[#allocation3 + $0x420] ss:$16 sps:$4 sm:$0xff]  }
  0x74   :  { %1706 = vmatprep.subr.bf16.mxu0 %v3367_v16  ;;  %1870 = vmatprep.subr.bf16.mxu1 %v3370_v17  ;;  %v3454_v16 = vld [vmem:[#allocation3 + $0x428] ss:$16 sps:$4 sm:$0xff]   ;;  %v3459_v17 = vld [vmem:[#allocation3 + $0x444] ss:$16 sps:$4 sm:$0xff]  }
  0x77   :  { %1707 = vmatpush1.bf16.msra.mxu0 %v3365_v18  ;;  %1871 = vmatpush1.bf16.msra.mxu1 %v3368_v19  ;;  %v3462_v18 = vld [vmem:[#allocation3 + $0x44c] ss:$16 sps:$4 sm:$0xff]   ;;  %v3457_v19 = vld [vmem:[#allocation3 + $0x440] ss:$16 sps:$4 sm:$0xff]  }
  0x78   :  { %1708 = vmatprep.subr.bf16.mxu0 %v3373_v20  ;;  %1872 = vmatprep.subr.bf16.mxu1 %v3376_v21  ;;  %v3460_v20 = vld [vmem:[#allocation3 + $0x448] ss:$16 sps:$4 sm:$0xff]   ;;  %v3465_v21 = vld [vmem:[#allocation3 + $0x464] ss:$16 sps:$4 sm:$0xff]  }
  0x7b   :  { %1709 = vmatpush1.bf16.msra.mxu0 %v3371_v22  ;;  %1873 = vmatpush1.bf16.msra.mxu1 %v3374_v23  ;;  %v3468_v22 = vld [vmem:[#allocation3 + $0x46c] ss:$16 sps:$4 sm:$0xff]   ;;  %v3463_v23 = vld [vmem:[#allocation3 + $0x460] ss:$16 sps:$4 sm:$0xff]  }
  0x7c   :  { %1710 = vmatprep.subr.bf16.mxu0 %v3379_v24  ;;  %1874 = vmatprep.subr.bf16.mxu1 %v3382_v25  ;;  %v3466_v24 = vld [vmem:[#allocation3 + $0x468] ss:$16 sps:$4 sm:$0xff]   ;;  %v3471_v25 = vld [vmem:[#allocation3 + $0x484] ss:$16 sps:$4 sm:$0xff]  }
  0x7f   :  { %1711 = vmatpush1.bf16.msra.mxu0 %v3377_v26  ;;  %1875 = vmatpush1.bf16.msra.mxu1 %v3380_v27  ;;  %v3474_v26 = vld [vmem:[#allocation3 + $0x48c] ss:$16 sps:$4 sm:$0xff]   ;;  %v3469_v27 = vld [vmem:[#allocation3 + $0x480] ss:$16 sps:$4 sm:$0xff]  }
  0x80   :  { %1712 = vmatprep.subr.bf16.mxu0 %v3385_v28  ;;  %1876 = vmatprep.subr.bf16.mxu1 %v3388_v29  ;;  %v3472_v28 = vld [vmem:[#allocation3 + $0x488] ss:$16 sps:$4 sm:$0xff]   ;;  %v3477_v29 = vld [vmem:[#allocation3 + $0x4a4] ss:$16 sps:$4 sm:$0xff]  }
  0x83   :  { %1713 = vmatpush1.bf16.msra.mxu0 %v3383_v32  ;;  %1877 = vmatpush1.bf16.msra.mxu1 %v3386_v33  ;;  %v3478_v32 = vld [vmem:[#allocation3 + $0x4a8] ss:$16 sps:$4 sm:$0xff]   ;;  %v3483_v33 = vld [vmem:[#allocation3 + $0x4c4] ss:$16 sps:$4 sm:$0xff]  }
  0x84   :  { %1714 = vmatprep.subr.bf16.mxu0 %v3391_v34  ;;  %1878 = vmatprep.subr.bf16.mxu1 %v3394_v35  ;;  %v3486_v34 = vld [vmem:[#allocation3 + $0x4cc] ss:$16 sps:$4 sm:$0xff]   ;;  %v3481_v35 = vld [vmem:[#allocation3 + $0x4c0] ss:$16 sps:$4 sm:$0xff]  }
  0x87   :  { %1715 = vmatpush1.bf16.msra.mxu0 %v3389_v36  ;;  %1879 = vmatpush1.bf16.msra.mxu1 %v3392_v37  ;;  %v3484_v36 = vld [vmem:[#allocation3 + $0x4c8] ss:$16 sps:$4 sm:$0xff]   ;;  %v3489_v37 = vld [vmem:[#allocation3 + $0x4e4] ss:$16 sps:$4 sm:$0xff]  }
  0x88   :  { %1716 = vmatprep.subr.bf16.mxu0 %v3397_v38  ;;  %1880 = vmatprep.subr.bf16.mxu1 %v3400_v39  ;;  %v3492_v38 = vld [vmem:[#allocation3 + $0x4ec] ss:$16 sps:$4 sm:$0xff]   ;;  %v3487_v39 = vld [vmem:[#allocation3 + $0x4e0] ss:$16 sps:$4 sm:$0xff]  }
  0x8b   :  { %1717 = vmatpush1.bf16.msra.mxu0 %v3395_v40  ;;  %1881 = vmatpush1.bf16.msra.mxu1 %v3398_v41  ;;  %v3490_v40 = vld [vmem:[#allocation3 + $0x4e8] ss:$16 sps:$4 sm:$0xff]   ;;  %v3495_v41 = vld [vmem:[#allocation3 + $0x504] ss:$16 sps:$4 sm:$0xff]  }
  0x8c   :  { %1718 = vmatprep.subr.bf16.mxu0 %v3403_v42  ;;  %1882 = vmatprep.subr.bf16.mxu1 %v3406_v43  ;;  %v3498_v42 = vld [vmem:[#allocation3 + $0x50c] ss:$16 sps:$4 sm:$0xff]   ;;  %v3493_v43 = vld [vmem:[#allocation3 + $0x500] ss:$16 sps:$4 sm:$0xff]  }
  0x8f   :  { %1719 = vmatpush1.bf16.msra.mxu0 %v3401_v44  ;;  %1883 = vmatpush1.bf16.msra.mxu1 %v3404_v45  ;;  %v3496_v44 = vld [vmem:[#allocation3 + $0x508] ss:$16 sps:$4 sm:$0xff]   ;;  %v3501_v45 = vld [vmem:[#allocation3 + $0x524] ss:$16 sps:$4 sm:$0xff]  }
  0x90   :  { %1720 = vmatprep.subr.bf16.mxu0 %v3409_v46  ;;  %1884 = vmatprep.subr.bf16.mxu1 %v3412_v47  ;;  %v3504_v46 = vld [vmem:[#allocation3 + $0x52c] ss:$16 sps:$4 sm:$0xff]   ;;  %v3499_v47 = vld [vmem:[#allocation3 + $0x520] ss:$16 sps:$4 sm:$0xff]  }
  0x93   :  { %1721 = vmatpush1.bf16.msra.mxu0 %v3407_v48  ;;  %1885 = vmatpush1.bf16.msra.mxu1 %v3410_v49  ;;  %v3502_v48 = vld [vmem:[#allocation3 + $0x528] ss:$16 sps:$4 sm:$0xff]   ;;  %v3507_v49 = vld [vmem:[#allocation3 + $0x544] ss:$16 sps:$4 sm:$0xff]  }
  0x94   :  { %1722 = vmatprep.subr.bf16.mxu0 %v3415_v50  ;;  %1886 = vmatprep.subr.bf16.mxu1 %v3418_v51  ;;  %v3510_v50 = vld [vmem:[#allocation3 + $0x54c] ss:$16 sps:$4 sm:$0xff]   ;;  %v3505_v51 = vld [vmem:[#allocation3 + $0x540] ss:$16 sps:$4 sm:$0xff]  }
  0x97   :  { %1723 = vmatpush1.bf16.msra.mxu0 %v3413_v52  ;;  %1887 = vmatpush1.bf16.msra.mxu1 %v3416_v53  ;;  %v3508_v52 = vld [vmem:[#allocation3 + $0x548] ss:$16 sps:$4 sm:$0xff]   ;;  %v3513_v53 = vld [vmem:[#allocation3 + $0x564] ss:$16 sps:$4 sm:$0xff]  }
  0x98   :  { %1724 = vmatprep.subr.bf16.mxu0 %v3421_v54  ;;  %1888 = vmatprep.subr.bf16.mxu1 %v3424_v55  ;;  %v3516_v54 = vld [vmem:[#allocation3 + $0x56c] ss:$16 sps:$4 sm:$0xff]   ;;  %v3511_v55 = vld [vmem:[#allocation3 + $0x560] ss:$16 sps:$4 sm:$0xff]  }
  0x9b   :  { %1725 = vmatpush1.bf16.msra.mxu0 %v3419_v56  ;;  %1889 = vmatpush1.bf16.msra.mxu1 %v3422_v57  ;;  %v3514_v56 = vld [vmem:[#allocation3 + $0x568] ss:$16 sps:$4 sm:$0xff]   ;;  %v3519_v57 = vld [vmem:[#allocation3 + $0x584] ss:$16 sps:$4 sm:$0xff]  }
  0x9c   :  { %1726 = vmatprep.subr.bf16.mxu0 %v3427_v58  ;;  %1890 = vmatprep.subr.bf16.mxu1 %v3430_v59  ;;  %v3522_v58 = vld [vmem:[#allocation3 + $0x58c] ss:$16 sps:$4 sm:$0xff]   ;;  %v3517_v59 = vld [vmem:[#allocation3 + $0x580] ss:$16 sps:$4 sm:$0xff]  }
  0x9f   :  { %1727 = vmatpush1.bf16.msra.mxu0 %v3425_v60  ;;  %1891 = vmatpush1.bf16.msra.mxu1 %v3428_v61  ;;  %v3520_v60 = vld [vmem:[#allocation3 + $0x588] ss:$16 sps:$4 sm:$0xff]   ;;  %v3525_v61 = vld [vmem:[#allocation3 + $0x5a4] ss:$16 sps:$4 sm:$0xff]  }
  0xa0   :  { %1728 = vmatprep.subr.bf16.mxu0 %v3433_v62  ;;  %1892 = vmatprep.subr.bf16.mxu1 %v3436_v63  ;;  %v3528_v62 = vld [vmem:[#allocation3 + $0x5ac] ss:$16 sps:$4 sm:$0xff]   ;;  %v3523_v63 = vld [vmem:[#allocation3 + $0x5a0] ss:$16 sps:$4 sm:$0xff]  }
  0xa3   :  { %1729 = vmatpush1.bf16.msra.mxu0 %v3431_v0  ;;  %1893 = vmatpush1.bf16.msra.mxu1 %v3434_v1  ;;  %v3526_v0 = vld [vmem:[#allocation3 + $0x5a8] ss:$16 sps:$4 sm:$0xff]   ;;  %v3531_v1 = vld [vmem:[#allocation3 + $0x5c4] ss:$16 sps:$4 sm:$0xff]  }
  0xa4   :  { %1730 = vmatprep.subr.bf16.mxu0 %v3439_v2  ;;  %1894 = vmatprep.subr.bf16.mxu1 %v3442_v3  ;;  %v3534_v2 = vld [vmem:[#allocation3 + $0x5cc] ss:$16 sps:$4 sm:$0xff]   ;;  %v3529_v3 = vld [vmem:[#allocation3 + $0x5c0] ss:$16 sps:$4 sm:$0xff]  }
  0xa7   :  { %1731 = vmatpush1.bf16.msra.mxu0 %v3437_v4  ;;  %1895 = vmatpush1.bf16.msra.mxu1 %v3440_v5  ;;  %v3532_v4 = vld [vmem:[#allocation3 + $0x5c8] ss:$16 sps:$4 sm:$0xff]   ;;  %v3537_v5 = vld [vmem:[#allocation3 + $0x5e4] ss:$16 sps:$4 sm:$0xff]  }
  0xa8   :  { %1741 = vmatprep.subr.bf16.mxu0 %v3447_v6  ;;  %1905 = vmatprep.subr.bf16.mxu1 %v3450_v7  ;;  %v3540_v6 = vld [vmem:[#allocation3 + $0x5ec] ss:$16 sps:$4 sm:$0xff]   ;;  %v3535_v7 = vld [vmem:[#allocation3 + $0x5e0] ss:$16 sps:$4 sm:$0xff]  }
  0xaa   :  { %1733 = vmatmul.mubr.bf16.vlgmr.msra.gmra.mrb[0].mxu0 %v2803_v8  ;;  %1897 = vmatmul.mubr.bf16.vlgmr.msra.gmra.mrb[0].mxu1 %v2803_v8  ;;  %v3538_v8 = vld [vmem:[#allocation3 + $0x5e8] ss:$16 sps:$4 sm:$0xff]  }
  0xab   :  { %1742 = vmatpush1.bf16.msra.mxu0 %v3445_v9  ;;  %1906 = vmatpush1.bf16.msra.mxu1 %v3448_v10  ;;  %v3545_v9 = vld [vmem:[#allocation3 + $0x604] ss:$16 sps:$4 sm:$0xff]   ;;  %v3548_v10 = vld [vmem:[#allocation3 + $0x60c] ss:$16 sps:$4 sm:$0xff]  }
  0xac   :  { %1743 = vmatprep.subr.bf16.mxu0 %v3453_v11  ;;  %1907 = vmatprep.subr.bf16.mxu1 %v3456_v13  ;;  %v3543_v11 = vld [vmem:[#allocation3 + $0x600] ss:$16 sps:$4 sm:$0xff]   ;;  %v3546_v13 = vld [vmem:[#allocation3 + $0x608] ss:$16 sps:$4 sm:$0xff]  }
  0xad   :  { %1773 = vmatprep.mubr.bf16.mxu0 %v2806_v14  ;;  %1937 = vmatprep.mubr.bf16.mxu1 %v2806_v14  ;;  %v3926_v14 = vld [vmem:[%s4048_s0 + $0x18] sm:$0xff] }
  0xaf   :  { %1744 = vmatpush1.bf16.msra.mxu0 %v3451_v15  ;;  %1908 = vmatpush1.bf16.msra.mxu1 %v3454_v16  ;;  %v2805_v15 = vcombine.low %v3919_v12, %v3919_v12  ;;  %v3551_v16 = vld [vmem:[#allocation3 + $0x624] ss:$16 sps:$4 sm:$0xff]   ;;  %v3555_v12 = vld [vmem:[#allocation3 + $0x640] ss:$16 sps:$4 sm:$0xff]  }
  0xb0   :  { %1745 = vmatprep.subr.bf16.mxu0 %v3459_v17  ;;  %1909 = vmatprep.subr.bf16.mxu1 %v3462_v18  ;;  %v3554_v17 = vld [vmem:[#allocation3 + $0x62c] ss:$16 sps:$4 sm:$0xff]   ;;  %v3549_v18 = vld [vmem:[#allocation3 + $0x620] ss:$16 sps:$4 sm:$0xff]  }
  0xb3   :  { %1746 = vmatpush1.bf16.msra.mxu0 %v3457_v19  ;;  %1910 = vmatpush1.bf16.msra.mxu1 %v3460_v20  ;;  %v3552_v19 = vld [vmem:[#allocation3 + $0x628] ss:$16 sps:$4 sm:$0xff]   ;;  %v2808_v20 = vcombine.high %v3926_v14, %v3926_v14 }
  0xb4   :  { %1747 = vmatprep.subr.bf16.mxu0 %v3465_v21  ;;  %1911 = vmatprep.subr.bf16.mxu1 %v3468_v22  ;;  %v3557_v21 = vld [vmem:[#allocation3 + $0x644] ss:$16 sps:$4 sm:$0xff]   ;;  %v3560_v22 = vld [vmem:[#allocation3 + $0x64c] ss:$16 sps:$4 sm:$0xff]  }
  0xb7   :  { %1748 = vmatpush1.bf16.msra.mxu0 %v3463_v23  ;;  %1912 = vmatpush1.bf16.msra.mxu1 %v3466_v24  ;;  %v3558_v23 = vld [vmem:[#allocation3 + $0x648] ss:$16 sps:$4 sm:$0xff]   ;;  %v3563_v24 = vld [vmem:[#allocation3 + $0x664] ss:$16 sps:$4 sm:$0xff]  }
  0xb8   :  { %1749 = vmatprep.subr.bf16.mxu0 %v3471_v25  ;;  %1913 = vmatprep.subr.bf16.mxu1 %v3474_v26  ;;  %v3566_v25 = vld [vmem:[#allocation3 + $0x66c] ss:$16 sps:$4 sm:$0xff]   ;;  %v3561_v26 = vld [vmem:[#allocation3 + $0x660] ss:$16 sps:$4 sm:$0xff]  }
  0xbb   :  { %1750 = vmatpush1.bf16.msra.mxu0 %v3469_v27  ;;  %1914 = vmatpush1.bf16.msra.mxu1 %v3472_v28  ;;  %v3564_v27 = vld [vmem:[#allocation3 + $0x668] ss:$16 sps:$4 sm:$0xff]   ;;  %v3569_v28 = vld [vmem:[#allocation3 + $0x684] ss:$16 sps:$4 sm:$0xff]  }
  0xbc   :  { %1751 = vmatprep.subr.bf16.mxu0 %v3477_v29  ;;  %1915 = vmatprep.subr.bf16.mxu1 %v3480_v30  ;;  %v3572_v29 = vld [vmem:[#allocation3 + $0x68c] ss:$16 sps:$4 sm:$0xff]   ;;  %v3567_v30 = vld [vmem:[#allocation3 + $0x680] ss:$16 sps:$4 sm:$0xff]  }
  0xbf   :  { %1752 = vmatpush1.bf16.msra.mxu0 %v3475_v31  ;;  %1916 = vmatpush1.bf16.msra.mxu1 %v3478_v32  ;;  %v3570_v31 = vld [vmem:[#allocation3 + $0x688] ss:$16 sps:$4 sm:$0xff]   ;;  %v3575_v32 = vld [vmem:[#allocation3 + $0x6a4] ss:$16 sps:$4 sm:$0xff]  }
  0xc0   :  { %1753 = vmatprep.subr.bf16.mxu0 %v3483_v33  ;;  %1917 = vmatprep.subr.bf16.mxu1 %v3486_v34  ;;  %v3578_v33 = vld [vmem:[#allocation3 + $0x6ac] ss:$16 sps:$4 sm:$0xff]   ;;  %v3573_v34 = vld [vmem:[#allocation3 + $0x6a0] ss:$16 sps:$4 sm:$0xff]  }
  0xc3   :  { %1754 = vmatpush1.bf16.msra.mxu0 %v3481_v35  ;;  %1918 = vmatpush1.bf16.msra.mxu1 %v3484_v36  ;;  %v3576_v35 = vld [vmem:[#allocation3 + $0x6a8] ss:$16 sps:$4 sm:$0xff]   ;;  %v3581_v36 = vld [vmem:[#allocation3 + $0x6c4] ss:$16 sps:$4 sm:$0xff]  }
  0xc4   :  { %1755 = vmatprep.subr.bf16.mxu0 %v3489_v37  ;;  %1919 = vmatprep.subr.bf16.mxu1 %v3492_v38  ;;  %v3584_v37 = vld [vmem:[#allocation3 + $0x6cc] ss:$16 sps:$4 sm:$0xff]   ;;  %v3579_v38 = vld [vmem:[#allocation3 + $0x6c0] ss:$16 sps:$4 sm:$0xff]  }
  0xc7   :  { %1756 = vmatpush1.bf16.msra.mxu0 %v3487_v39  ;;  %1920 = vmatpush1.bf16.msra.mxu1 %v3490_v40  ;;  %v3582_v39 = vld [vmem:[#allocation3 + $0x6c8] ss:$16 sps:$4 sm:$0xff]   ;;  %v3587_v40 = vld [vmem:[#allocation3 + $0x6e4] ss:$16 sps:$4 sm:$0xff]  }
  0xc8   :  { %1757 = vmatprep.subr.bf16.mxu0 %v3495_v41  ;;  %1921 = vmatprep.subr.bf16.mxu1 %v3498_v42  ;;  %v3590_v41 = vld [vmem:[#allocation3 + $0x6ec] ss:$16 sps:$4 sm:$0xff]   ;;  %v3585_v42 = vld [vmem:[#allocation3 + $0x6e0] ss:$16 sps:$4 sm:$0xff]  }
  0xcb   :  { %1758 = vmatpush1.bf16.msra.mxu0 %v3493_v43  ;;  %1922 = vmatpush1.bf16.msra.mxu1 %v3496_v44  ;;  %v3588_v43 = vld [vmem:[#allocation3 + $0x6e8] ss:$16 sps:$4 sm:$0xff]   ;;  %v3593_v44 = vld [vmem:[#allocation3 + $0x704] ss:$16 sps:$4 sm:$0xff]  }
  0xcc   :  { %1759 = vmatprep.subr.bf16.mxu0 %v3501_v45  ;;  %1923 = vmatprep.subr.bf16.mxu1 %v3504_v46  ;;  %v3596_v45 = vld [vmem:[#allocation3 + $0x70c] ss:$16 sps:$4 sm:$0xff]   ;;  %v3591_v46 = vld [vmem:[#allocation3 + $0x700] ss:$16 sps:$4 sm:$0xff]  }
  0xcf   :  { %1760 = vmatpush1.bf16.msra.mxu0 %v3499_v47  ;;  %1924 = vmatpush1.bf16.msra.mxu1 %v3502_v48  ;;  %v3594_v47 = vld [vmem:[#allocation3 + $0x708] ss:$16 sps:$4 sm:$0xff]   ;;  %v3599_v48 = vld [vmem:[#allocation3 + $0x724] ss:$16 sps:$4 sm:$0xff]  }
  0xd0   :  { %1761 = vmatprep.subr.bf16.mxu0 %v3507_v49  ;;  %1925 = vmatprep.subr.bf16.mxu1 %v3510_v50  ;;  %v3602_v49 = vld [vmem:[#allocation3 + $0x72c] ss:$16 sps:$4 sm:$0xff]   ;;  %v3597_v50 = vld [vmem:[#allocation3 + $0x720] ss:$16 sps:$4 sm:$0xff]  }
  0xd3   :  { %1762 = vmatpush1.bf16.msra.mxu0 %v3505_v51  ;;  %1926 = vmatpush1.bf16.msra.mxu1 %v3508_v52  ;;  %v3600_v51 = vld [vmem:[#allocation3 + $0x728] ss:$16 sps:$4 sm:$0xff]   ;;  %v3605_v52 = vld [vmem:[#allocation3 + $0x744] ss:$16 sps:$4 sm:$0xff]  }
  0xd4   :  { %1763 = vmatprep.subr.bf16.mxu0 %v3513_v53  ;;  %1927 = vmatprep.subr.bf16.mxu1 %v3516_v54  ;;  %v3608_v53 = vld [vmem:[#allocation3 + $0x74c] ss:$16 sps:$4 sm:$0xff]   ;;  %v3603_v54 = vld [vmem:[#allocation3 + $0x740] ss:$16 sps:$4 sm:$0xff]  }
  0xd7   :  { %1764 = vmatpush1.bf16.msra.mxu0 %v3511_v55  ;;  %1928 = vmatpush1.bf16.msra.mxu1 %v3514_v56  ;;  %v3606_v55 = vld [vmem:[#allocation3 + $0x748] ss:$16 sps:$4 sm:$0xff]   ;;  %v3611_v56 = vld [vmem:[#allocation3 + $0x764] ss:$16 sps:$4 sm:$0xff]  }
  0xd8   :  { %1765 = vmatprep.subr.bf16.mxu0 %v3519_v57  ;;  %1929 = vmatprep.subr.bf16.mxu1 %v3522_v58  ;;  %v3614_v57 = vld [vmem:[#allocation3 + $0x76c] ss:$16 sps:$4 sm:$0xff]   ;;  %v3609_v58 = vld [vmem:[#allocation3 + $0x760] ss:$16 sps:$4 sm:$0xff]  }
  0xdb   :  { %1766 = vmatpush1.bf16.msra.mxu0 %v3517_v59  ;;  %1930 = vmatpush1.bf16.msra.mxu1 %v3520_v60  ;;  %v3612_v59 = vld [vmem:[#allocation3 + $0x768] ss:$16 sps:$4 sm:$0xff]   ;;  %v3617_v60 = vld [vmem:[#allocation3 + $0x784] ss:$16 sps:$4 sm:$0xff]  }
  0xdc   :  { %1767 = vmatprep.subr.bf16.mxu0 %v3525_v61  ;;  %1931 = vmatprep.subr.bf16.mxu1 %v3528_v62  ;;  %v3620_v61 = vld [vmem:[#allocation3 + $0x78c] ss:$16 sps:$4 sm:$0xff]   ;;  %v3615_v62 = vld [vmem:[#allocation3 + $0x780] ss:$16 sps:$4 sm:$0xff]  }
  0xdf   :  { %1768 = vmatpush1.bf16.msra.mxu0 %v3523_v63  ;;  %1932 = vmatpush1.bf16.msra.mxu1 %v3526_v0  ;;  %v3618_v63 = vld [vmem:[#allocation3 + $0x788] ss:$16 sps:$4 sm:$0xff]   ;;  %v3623_v0 = vld [vmem:[#allocation3 + $0x7a4] ss:$16 sps:$4 sm:$0xff]  }
  0xe0   :  { %1769 = vmatprep.subr.bf16.mxu0 %v3531_v1  ;;  %1933 = vmatprep.subr.bf16.mxu1 %v3534_v2  ;;  %v3626_v1 = vld [vmem:[#allocation3 + $0x7ac] ss:$16 sps:$4 sm:$0xff]   ;;  %v3621_v2 = vld [vmem:[#allocation3 + $0x7a0] ss:$16 sps:$4 sm:$0xff]  }
  0xe3   :  { %1770 = vmatpush1.bf16.msra.mxu0 %v3529_v3  ;;  %1934 = vmatpush1.bf16.msra.mxu1 %v3532_v4  ;;  %v3624_v3 = vld [vmem:[#allocation3 + $0x7a8] ss:$16 sps:$4 sm:$0xff]   ;;  %v3629_v4 = vld [vmem:[#allocation3 + $0x7c4] ss:$16 sps:$4 sm:$0xff]  }
  0xe4   :  { %1771 = vmatprep.subr.bf16.mxu0 %v3537_v5  ;;  %1935 = vmatprep.subr.bf16.mxu1 %v3540_v6  ;;  %v3632_v5 = vld [vmem:[#allocation3 + $0x7cc] ss:$16 sps:$4 sm:$0xff]   ;;  %v3627_v6 = vld [vmem:[#allocation3 + $0x7c0] ss:$16 sps:$4 sm:$0xff]  }
  0xe7   :  { %1772 = vmatpush1.bf16.msra.mxu0 %v3535_v7  ;;  %1936 = vmatpush1.bf16.msra.mxu1 %v3538_v8  ;;  %v3630_v7 = vld [vmem:[#allocation3 + $0x7c8] ss:$16 sps:$4 sm:$0xff]   ;;  %v3635_v8 = vld [vmem:[#allocation3 + $0x7e4] ss:$16 sps:$4 sm:$0xff]  }
  0xe8   :  { %1782 = vmatprep.subr.bf16.mxu0 %v3545_v9  ;;  %1946 = vmatprep.subr.bf16.mxu1 %v3548_v10  ;;  %v3638_v9 = vld [vmem:[#allocation3 + $0x7ec] ss:$16 sps:$4 sm:$0xff]   ;;  %v3633_v10 = vld [vmem:[#allocation3 + $0x7e0] ss:$16 sps:$4 sm:$0xff]  }
  0xea   :  { %1774 = vmatmul.mubr.bf16.vlgmr.msra.gmra.mrb[0].mxu0 %v2805_v15  ;;  %1938 = vmatmul.mubr.bf16.vlgmr.msra.gmra.mrb[0].mxu1 %v2805_v15  ;;  %v2807_v15 = vcombine.low %v3926_v14, %v3926_v14  ;;  %v3653_v14 = vld [vmem:[#allocation5 + $0x40] ss:$8 sps:$4 sm:$0xff]  }
  0xeb   :  { %1783 = vmatpush1.bf16.msra.mxu0 %v3543_v11  ;;  %1947 = vmatpush1.bf16.msra.mxu1 %v3546_v13  ;;  %v3636_v11 = vld [vmem:[#allocation3 + $0x7e8] ss:$16 sps:$4 sm:$0xff]   ;;  %v3643_v13 = vld [vmem:[#allocation5 + $0x4] ss:$8 sps:$4 sm:$0xff]  }
  0xec   :  { %1784 = vmatprep.subr.bf16.mxu0 %v3551_v16  ;;  %1948 = vmatprep.subr.bf16.mxu1 %v3554_v17  ;;  %v3641_v16 = vld [vmem:[#allocation5] ss:$8 sps:$4 sm:$0xff]   ;;  %v3646_v17 = vld [vmem:[#allocation5 + $0x14] ss:$8 sps:$4 sm:$0xff]  }
  0xed   :  { %1814 = vmatprep.mubr.bf16.mxu0 %v2808_v20  ;;  %1978 = vmatprep.mubr.bf16.mxu1 %v2808_v20  ;;  %v3647_v20 = vld [vmem:[#allocation5 + $0x20] ss:$8 sps:$4 sm:$0xff]  }
  0xef   :  { %1785 = vmatpush1.bf16.msra.mxu0 %v3549_v18  ;;  %1949 = vmatpush1.bf16.msra.mxu1 %v3552_v19  ;;  %v3644_v18 = vld [vmem:[#allocation5 + $0x10] ss:$8 sps:$4 sm:$0xff]   ;;  %v3649_v19 = vld [vmem:[#allocation5 + $0x24] ss:$8 sps:$4 sm:$0xff]  }
  0xf0   :  { %1786 = vmatprep.subr.bf16.mxu0 %v3557_v21  ;;  %1950 = vmatprep.subr.bf16.mxu1 %v3560_v22  ;;  %v3652_v21 = vld [vmem:[#allocation5 + $0x34] ss:$8 sps:$4 sm:$0xff]   ;;  %v3650_v22 = vld [vmem:[#allocation5 + $0x30] ss:$8 sps:$4 sm:$0xff]  }
  0xf3   :  { %1787 = vmatpush1.bf16.msra.mxu0 %v3555_v12  ;;  %1951 = vmatpush1.bf16.msra.mxu1 %v3558_v23  ;;  %v3655_v12 = vld [vmem:[#allocation5 + $0x44] ss:$8 sps:$4 sm:$0xff]   ;;  %v3658_v23 = vld [vmem:[#allocation5 + $0x54] ss:$8 sps:$4 sm:$0xff]  }
  0xf4   :  { %1788 = vmatprep.subr.bf16.mxu0 %v3563_v24  ;;  %1952 = vmatprep.subr.bf16.mxu1 %v3566_v25  ;;  %v3656_v24 = vld [vmem:[#allocation5 + $0x50] ss:$8 sps:$4 sm:$0xff]   ;;  %v3661_v25 = vld [vmem:[#allocation5 + $0x64] ss:$8 sps:$4 sm:$0xff]  }
  0xf7   :  { %1789 = vmatpush1.bf16.msra.mxu0 %v3561_v26  ;;  %1953 = vmatpush1.bf16.msra.mxu1 %v3564_v27  ;;  %v3659_v26 = vld [vmem:[#allocation5 + $0x60] ss:$8 sps:$4 sm:$0xff]   ;;  %v3664_v27 = vld [vmem:[#allocation5 + $0x74] ss:$8 sps:$4 sm:$0xff]  }
  0xf8   :  { %1790 = vmatprep.subr.bf16.mxu0 %v3569_v28  ;;  %1954 = vmatprep.subr.bf16.mxu1 %v3572_v29  ;;  %v3662_v28 = vld [vmem:[#allocation5 + $0x70] ss:$8 sps:$4 sm:$0xff]   ;;  %v3667_v29 = vld [vmem:[#allocation5 + $0x84] ss:$8 sps:$4 sm:$0xff]  }
  0xfb   :  { %1791 = vmatpush1.bf16.msra.mxu0 %v3567_v30  ;;  %1955 = vmatpush1.bf16.msra.mxu1 %v3570_v31  ;;  %v3665_v30 = vld [vmem:[#allocation5 + $0x80] ss:$8 sps:$4 sm:$0xff]   ;;  %v3670_v31 = vld [vmem:[#allocation5 + $0x94] ss:$8 sps:$4 sm:$0xff]  }
  0xfc   :  { %1792 = vmatprep.subr.bf16.mxu0 %v3575_v32  ;;  %1956 = vmatprep.subr.bf16.mxu1 %v3578_v33  ;;  %v3668_v32 = vld [vmem:[#allocation5 + $0x90] ss:$8 sps:$4 sm:$0xff]   ;;  %v3673_v33 = vld [vmem:[#allocation5 + $0xa4] ss:$8 sps:$4 sm:$0xff]  }
  0xff   :  { %1793 = vmatpush1.bf16.msra.mxu0 %v3573_v34  ;;  %1957 = vmatpush1.bf16.msra.mxu1 %v3576_v35  ;;  %v3671_v34 = vld [vmem:[#allocation5 + $0xa0] ss:$8 sps:$4 sm:$0xff]   ;;  %v3676_v35 = vld [vmem:[#allocation5 + $0xb4] ss:$8 sps:$4 sm:$0xff]  }
 0x100   :  { %1794 = vmatprep.subr.bf16.mxu0 %v3581_v36  ;;  %1958 = vmatprep.subr.bf16.mxu1 %v3584_v37  ;;  %v3674_v36 = vld [vmem:[#allocation5 + $0xb0] ss:$8 sps:$4 sm:$0xff]   ;;  %v3679_v37 = vld [vmem:[#allocation5 + $0xc4] ss:$8 sps:$4 sm:$0xff]  }
 0x103   :  { %1795 = vmatpush1.bf16.msra.mxu0 %v3579_v38  ;;  %1959 = vmatpush1.bf16.msra.mxu1 %v3582_v39  ;;  %v3677_v38 = vld [vmem:[#allocation5 + $0xc0] ss:$8 sps:$4 sm:$0xff]   ;;  %v3682_v39 = vld [vmem:[#allocation5 + $0xd4] ss:$8 sps:$4 sm:$0xff]  }
 0x104   :  { %1796 = vmatprep.subr.bf16.mxu0 %v3587_v40  ;;  %1960 = vmatprep.subr.bf16.mxu1 %v3590_v41  ;;  %v3680_v40 = vld [vmem:[#allocation5 + $0xd0] ss:$8 sps:$4 sm:$0xff]   ;;  %v3685_v41 = vld [vmem:[#allocation5 + $0xe4] ss:$8 sps:$4 sm:$0xff]  }
 0x107   :  { %1797 = vmatpush1.bf16.msra.mxu0 %v3585_v42  ;;  %1961 = vmatpush1.bf16.msra.mxu1 %v3588_v43  ;;  %v3683_v42 = vld [vmem:[#allocation5 + $0xe0] ss:$8 sps:$4 sm:$0xff]   ;;  %v3688_v43 = vld [vmem:[#allocation5 + $0xf4] ss:$8 sps:$4 sm:$0xff]  }
 0x108   :  { %1798 = vmatprep.subr.bf16.mxu0 %v3593_v44  ;;  %1962 = vmatprep.subr.bf16.mxu1 %v3596_v45  ;;  %v3686_v44 = vld [vmem:[#allocation5 + $0xf0] ss:$8 sps:$4 sm:$0xff]   ;;  %v3691_v45 = vld [vmem:[#allocation5 + $0x104] ss:$8 sps:$4 sm:$0xff]  }
 0x10b   :  { %1799 = vmatpush1.bf16.msra.mxu0 %v3591_v46  ;;  %1963 = vmatpush1.bf16.msra.mxu1 %v3594_v47  ;;  %v3737_v46 = vld [vmem:[%s4053_s5 + $0x40] sm:$0xff]  }
 0x10c   :  { %1800 = vmatprep.subr.bf16.mxu0 %v3599_v48  ;;  %1964 = vmatprep.subr.bf16.mxu1 %v3602_v49  ;;  %v3738_v47 = vld [vmem:[%s4053_s5] sm:$0xff]   ;;  %v3739_v48 = vld [vmem:[%s4053_s5 + $0x48] sm:$0xff]  }
 0x10d   :  { %v3740_v49 = vld [vmem:[%s4053_s5 + $0x8] sm:$0xff]  }
 0x10f   :  { %1801 = vmatpush1.bf16.msra.mxu0 %v3597_v50  ;;  %1965 = vmatpush1.bf16.msra.mxu1 %v3600_v51  ;;  %v3741_v50 = vld [vmem:[%s4053_s5 + $0x50] sm:$0xff]  }
 0x110   :  { %1802 = vmatprep.subr.bf16.mxu0 %v3605_v52  ;;  %1966 = vmatprep.subr.bf16.mxu1 %v3608_v53  ;;  %v3742_v51 = vld [vmem:[%s4053_s5 + $0x10] sm:$0xff]   ;;  %v3743_v52 = vld [vmem:[%s4053_s5 + $0x58] sm:$0xff]  }
 0x111   :  { %v3744_v53 = vld [vmem:[%s4053_s5 + $0x18] sm:$0xff]  }
 0x113   :  { %1803 = vmatpush1.bf16.msra.mxu0 %v3603_v54  ;;  %1967 = vmatpush1.bf16.msra.mxu1 %v3606_v55  ;;  %v3745_v54 = vld [vmem:[%s4053_s5 + $0x60] sm:$0xff]  }
 0x114   :  { %1804 = vmatprep.subr.bf16.mxu0 %v3611_v56  ;;  %1968 = vmatprep.subr.bf16.mxu1 %v3614_v57  ;;  %v3746_v55 = vld [vmem:[%s4053_s5 + $0x20] sm:$0xff]   ;;  %v3747_v56 = vld [vmem:[%s4053_s5 + $0x68] sm:$0xff]   ;;  %v331_v57 = vlaneseq }
 0x117   :  { %1805 = vmatpush1.bf16.msra.mxu0 %v3609_v58  ;;  %1969 = vmatpush1.bf16.msra.mxu1 %v3612_v59  ;;  %v3967_v58 = vshrl.u32 %v331_v57, 7 }
 0x118   :  { %1806 = vmatprep.subr.bf16.mxu0 %v3617_v60  ;;  %1970 = vmatprep.subr.bf16.mxu1 %v3620_v61  ;;  %v3975_v60 = vld [vmem:[%s4050_s2] sm:$0xf] }
 0x119   :  { %v3970_v59 = vsub.s32 0, %v3967_v58  ;;  %v337_v61 = vsub.s32 1, %v3967_v58 }
 0x11b   :  { %1807 = vmatpush1.bf16.msra.mxu0 %v3615_v62  ;;  %1971 = vmatpush1.bf16.msra.mxu1 %v3618_v63  ;;  %v345_v62 = vsub.s32 3, %v3967_v58  ;;  %v334_v63 = vrot.slane %v3975_v60, %v3970_v59 }
 0x11c   :  { %1808 = vmatprep.subr.bf16.mxu0 %v3623_v0  ;;  %1972 = vmatprep.subr.bf16.mxu1 %v3626_v1  ;;  %v338_v0 = vrot.slane %v3975_v60, %v337_v61 }
 0x11d   :  { %v346_v1 = vrot.slane %v3975_v60, %v345_v62 }
 0x11f   :  { %1809 = vmatpush1.bf16.msra.mxu0 %v3621_v2  ;;  %1973 = vmatpush1.bf16.msra.mxu1 %v3624_v3 }
 0x120   :  { %1810 = vmatprep.subr.bf16.mxu0 %v3629_v4  ;;  %1974 = vmatprep.subr.bf16.mxu1 %v3632_v5 }
 0x123   :  { %1811 = vmatpush1.bf16.msra.mxu0 %v3627_v6  ;;  %1975 = vmatpush1.bf16.msra.mxu1 %v3630_v7 }
 0x124   :  { %1812 = vmatprep.subr.bf16.mxu0 %v3635_v8  ;;  %1976 = vmatprep.subr.bf16.mxu1 %v3638_v9 }
 0x127   :  { %1813 = vmatpush1.bf16.msra.mxu0 %v3633_v10  ;;  %1977 = vmatpush1.bf16.msra.mxu1 %v3636_v11 }
 0x128   :  { %2395 = vmatprep.subr.bf16.mxu0 %v3643_v13  ;;  %3156 = vmatprep.subr.bf16.mxu1 %v3737_v46  ;;  %v3727_v46 = vld [vmem:[#allocation5 + $0x1c4] ss:$8 sps:$4 sm:$0xff]  }
 0x12a   :  { %1815 = vmatmul.mubr.bf16.vlgmr.msra.gmra.mrb[0].mxu0 %v2807_v15  ;;  %1979 = vmatmul.mubr.bf16.vlgmr.msra.gmra.mrb[0].mxu1 %v2807_v15 }
 0x12b   :  { %2396 = vmatpush1.bf16.msra.mxu0 %v3641_v16  ;;  %3157 = vmatpush3.bf16.msra.mxu1 %v3738_v47  ;;  %v3725_v47 = vld [vmem:[#allocation5 + $0x1c0] ss:$8 sps:$4 sm:$0xff]  }
 0x12c   :  { %2397 = vmatprep.subr.bf16.mxu0 %v3646_v17  ;;  %3158 = vmatprep.subr.bf16.mxu1 %v3739_v48 }
 0x12f   :  { %2398 = vmatpush1.bf16.msra.mxu0 %v3644_v18  ;;  %3159 = vmatpush3.bf16.msra.mxu1 %v3740_v49  ;;  %v3730_v49 = vld [vmem:[#allocation5 + $0x1d4] ss:$8 sps:$4 sm:$0xff]  }
 0x130   :  { %2399 = vmatprep.subr.bf16.mxu0 %v3649_v19  ;;  %3160 = vmatprep.subr.bf16.mxu1 %v3741_v50  ;;  %v3728_v50 = vld [vmem:[#allocation5 + $0x1d0] ss:$8 sps:$4 sm:$0xff]  }
 0x133   :  { %2400 = vmatpush1.bf16.msra.mxu0 %v3647_v20  ;;  %3161 = vmatpush3.bf16.msra.mxu1 %v3742_v51 }
 0x134   :  { %2401 = vmatprep.subr.bf16.mxu0 %v3652_v21  ;;  %3162 = vmatprep.subr.bf16.mxu1 %v3743_v52  ;;  %v3733_v52 = vld [vmem:[#allocation5 + $0x1e4] ss:$8 sps:$4 sm:$0xff]  }
 0x137   :  { %2402 = vmatpush1.bf16.msra.mxu0 %v3650_v22  ;;  %3163 = vmatpush3.bf16.msra.mxu1 %v3744_v53  ;;  %v3689_v22 = vld [vmem:[#allocation5 + $0x100] ss:$8 sps:$4 sm:$0xff]  }
 0x138   :  { %2403 = vmatprep.subr.bf16.mxu0 %v3655_v12  ;;  %3164 = vmatprep.subr.bf16.mxu1 %v3745_v54  ;;  %v3731_v53 = vld [vmem:[#allocation5 + $0x1e0] ss:$8 sps:$4 sm:$0xff]  }
 0x13b   :  { %2404 = vmatpush1.bf16.msra.mxu0 %v3653_v14  ;;  %3165 = vmatpush3.bf16.msra.mxu1 %v3746_v55  ;;  %v3694_v14 = vld [vmem:[#allocation5 + $0x114] ss:$8 sps:$4 sm:$0xff]  }
 0x13c   :  { %2405 = vmatprep.subr.bf16.mxu0 %v3658_v23  ;;  %3166 = vmatprep.subr.bf16.mxu1 %v3747_v56  ;;  %v3736_v55 = vld [vmem:[#allocation5 + $0x1f4] ss:$8 sps:$4 sm:$0xff]   ;;  %v3734_v56 = vld [vmem:[#allocation5 + $0x1f0] ss:$8 sps:$4 sm:$0xff]  }
 0x13f   :  { %2406 = vmatpush1.bf16.msra.mxu0 %v3656_v24  ;;  %v3692_v24 = vld [vmem:[#allocation5 + $0x110] ss:$8 sps:$4 sm:$0xff]  }
 0x140   :  { %2407 = vmatprep.subr.bf16.mxu0 %v3661_v25  ;;  %v3697_v25 = vld [vmem:[#allocation5 + $0x124] ss:$8 sps:$4 sm:$0xff]  }
 0x143   :  { %2408 = vmatpush1.bf16.msra.mxu0 %v3659_v26  ;;  %v3695_v26 = vld [vmem:[#allocation5 + $0x120] ss:$8 sps:$4 sm:$0xff]  }
 0x144   :  { %2409 = vmatprep.subr.bf16.mxu0 %v3664_v27  ;;  %v3700_v27 = vld [vmem:[#allocation5 + $0x134] ss:$8 sps:$4 sm:$0xff]  }
 0x147   :  { %2410 = vmatpush1.bf16.msra.mxu0 %v3662_v28  ;;  %v3698_v28 = vld [vmem:[#allocation5 + $0x130] ss:$8 sps:$4 sm:$0xff]  }
 0x148   :  { %2411 = vmatprep.subr.bf16.mxu0 %v3667_v29  ;;  %v3703_v29 = vld [vmem:[#allocation5 + $0x144] ss:$8 sps:$4 sm:$0xff]  }
 0x14b   :  { %2412 = vmatpush1.bf16.msra.mxu0 %v3665_v30  ;;  %v3701_v30 = vld [vmem:[#allocation5 + $0x140] ss:$8 sps:$4 sm:$0xff]  }
 0x14c   :  { %2413 = vmatprep.subr.bf16.mxu0 %v3670_v31  ;;  %v3706_v31 = vld [vmem:[#allocation5 + $0x154] ss:$8 sps:$4 sm:$0xff]  }
 0x14f   :  { %2414 = vmatpush1.bf16.msra.mxu0 %v3668_v32  ;;  %v3704_v32 = vld [vmem:[#allocation5 + $0x150] ss:$8 sps:$4 sm:$0xff]  }
 0x150   :  { %2415 = vmatprep.subr.bf16.mxu0 %v3673_v33  ;;  %v3709_v33 = vld [vmem:[#allocation5 + $0x164] ss:$8 sps:$4 sm:$0xff]  }
 0x153   :  { %2416 = vmatpush1.bf16.msra.mxu0 %v3671_v34  ;;  %v3707_v34 = vld [vmem:[#allocation5 + $0x160] ss:$8 sps:$4 sm:$0xff]  }
 0x154   :  { %2417 = vmatprep.subr.bf16.mxu0 %v3676_v35  ;;  %v3712_v35 = vld [vmem:[#allocation5 + $0x174] ss:$8 sps:$4 sm:$0xff]  }
 0x157   :  { %2418 = vmatpush1.bf16.msra.mxu0 %v3674_v36  ;;  %v3710_v36 = vld [vmem:[#allocation5 + $0x170] ss:$8 sps:$4 sm:$0xff]  }
 0x158   :  { %2419 = vmatprep.subr.bf16.mxu0 %v3679_v37  ;;  %v3715_v37 = vld [vmem:[#allocation5 + $0x184] ss:$8 sps:$4 sm:$0xff]  }
 0x15b   :  { %2420 = vmatpush1.bf16.msra.mxu0 %v3677_v38  ;;  %v3713_v38 = vld [vmem:[#allocation5 + $0x180] ss:$8 sps:$4 sm:$0xff]  }
 0x15c   :  { %2421 = vmatprep.subr.bf16.mxu0 %v3682_v39  ;;  %v3718_v39 = vld [vmem:[#allocation5 + $0x194] ss:$8 sps:$4 sm:$0xff]  }
 0x15f   :  { %2422 = vmatpush1.bf16.msra.mxu0 %v3680_v40  ;;  %v3716_v40 = vld [vmem:[#allocation5 + $0x190] ss:$8 sps:$4 sm:$0xff]  }
 0x160   :  { %2423 = vmatprep.subr.bf16.mxu0 %v3685_v41  ;;  %v3721_v41 = vld [vmem:[#allocation5 + $0x1a4] ss:$8 sps:$4 sm:$0xff]  }
 0x163   :  { %2424 = vmatpush1.bf16.msra.mxu0 %v3683_v42  ;;  %v3719_v42 = vld [vmem:[#allocation5 + $0x1a0] ss:$8 sps:$4 sm:$0xff]  }
 0x164   :  { %2425 = vmatprep.subr.bf16.mxu0 %v3688_v43  ;;  %v3724_v43 = vld [vmem:[#allocation5 + $0x1b4] ss:$8 sps:$4 sm:$0xff]  }
 0x167   :  { %2426 = vmatpush1.bf16.msra.mxu0 %v3686_v44  ;;  %v3722_v44 = vld [vmem:[#allocation5 + $0x1b0] ss:$8 sps:$4 sm:$0xff]  }
 0x168   :  { %2436 = vmatprep.subr.bf16.mxu0 %v3691_v45  ;;  %v341_v45 = vsub.s32 2, %v3967_v58  ;;  %v3754_v58 = vld [vmem:[%s4055_s7 + $0x8] sm:$0xff]  }
 0x16a   :  { %v342_v48 = vrot.slane %v3975_v60, %v341_v45  ;;  %v3748_v60 = vld [vmem:[%s4053_s5 + $0x28] sm:$0xff]  }
 0x16b   :  { %3167 = vmatpush3.bf16.msra.mxu1 %v3748_v60 }
 0x1fd   :  { %v1816_v2 = vpop.f32.mrb[0].mxu0  ;;  %v3985_v3 = vpop.f32.mrb[0].mxu1 }
 0x1fe   :  { %v3207_v4 = vadd.f32 %v1816_v2, %v334_v63  ;;  %v1818_v5 = vpop.f32.mrb[1].mxu0  ;;  %v1982_v6 = vpop.f32.mrb[1].mxu1  ;;  %v3209_v51 = vadd.f32 %v3985_v3, %v342_v48  ;;  %v3749_v63 = vld [vmem:[%s4053_s5 + $0x70] sm:$0xff]   ;;  %v3752_v2 = vld [vmem:[%s4053_s5 + $0x38] sm:$0xff]   ;;  %v3815_v3 = vmov 0.0  }
 0x1ff   :  { %v3208_v7 = vadd.f32 %v1818_v5, %v338_v0  ;;  %v3210_v8 = vadd.f32 %v1982_v6, %v346_v1  ;;  %v1820_v9 = vpop.f32.mrb[2].mxu0  ;;  %v1984_v10 = vpop.f32.mrb[2].mxu1  ;;  %v3750_v0 = vld [vmem:[%s4053_s5 + $0x30] sm:$0xff]   ;;  %3168 = vmatprep.subr.bf16.mxu1 %v3749_v63  ;;  %v3751_v1 = vld [vmem:[%s4053_s5 + $0x78] sm:$0xff]   ;;  %v3155_v48 = vld [vmem:[#allocation2] ss:$0 sm:$0xff] }
 0x200   :  { %v1987_v11 = vmul.f32 0.2, %v3207_v4  ;;  %v1821_v13 = vpop.f32.mrb[3].mxu0  ;;  %v1985_v15 = vpop.f32.mrb[3].mxu1  ;;  %v1989_v54 = vmul.f32 0.2, %v3209_v51  ;;  %3169 = vmatpush3.bf16.msra.mxu1 %v3750_v0 }
 0x201   :  { %v1988_v16 = vmul.f32 0.2, %v3208_v7  ;;  %v1990_v17 = vmul.f32 0.2, %v3210_v8  ;;  %3170 = vmatprep.subr.bf16.mxu1 %v3751_v1 }
 0x202   :  { %v1991_v18 = vmax.f32 %v3207_v4, %v1987_v11  ;;  %v1993_v57 = vmax.f32 %v3209_v51, %v1989_v54  ;;  %v2063_v4 = vld [vmem:[%s4052_s4] sm:$0x3] }
 0x203   :  { %v1992_v19 = vmax.f32 %v3208_v7, %v1988_v16  ;;  %v1994_v20 = vmax.f32 %v3210_v8, %v1990_v17  ;;  %v2068_v5 = vrot.slane %v2063_v4, %v3970_v59  ;;  %v2072_v6 = vrot.slane %v2063_v4, %v337_v61  ;;  %v3755_v61 = vld [vmem:[%s4055_s7 + $0x10] sm:$0xff]  }
 0x204   :  { %v1995_v12 = vpack.c.bf16 %v1991_v18, %v1991_v18  ;;  %v1997_v62 = vpack.c.bf16 %v1993_v57, %v1993_v57  ;;  %3171 = vmatpush3.bf16.msra.mxu1 %v3752_v2 }
 0x205   :  { %v1996_v21 = vpack.c.bf16 %v1992_v19, %v1992_v19  ;;  %v1998_v23 = vpack.c.bf16 %v1994_v20, %v1994_v20  ;;  %3187 = vmatprep.subr.bf16.mxu1 %v3815_v3  ;;  %v3753_v20 = vld [vmem:[%s4055_s7] sm:$0xff]  }
 0x207   :  { %2427 = vmatprep.mubr.bf16.mxu0 %v1996_v21 }
 0x208   :  { %2428 = vmatmul.mubr.bf16.vlgmr.msra.gmra.mrb[4].mxu0 %v1995_v12  ;;  %v3757_v12 = vld [vmem:[%s4055_s7 + $0x20] sm:$0xff]  }
 0x209   :  { %2437 = vmatpush1.bf16.msra.mxu0 %v3689_v22  ;;  %2468 = vmatprep.mubr.bf16.mxu0 %v1998_v23  ;;  %v3756_v22 = vld [vmem:[%s4055_s7 + $0x18] sm:$0xff]   ;;  %v3759_v23 = vld [vmem:[%s4055_s7 + $0x30] sm:$0xff]  }
 0x20a   :  { %2438 = vmatprep.subr.bf16.mxu0 %v3694_v14  ;;  %v3758_v14 = vld [vmem:[%s4055_s7 + $0x28] sm:$0xff]  }
 0x20d   :  { %2439 = vmatpush1.bf16.msra.mxu0 %v3692_v24  ;;  %v3760_v24 = vld [vmem:[%s4055_s7 + $0x38] sm:$0xff]  }
 0x20e   :  { %2440 = vmatprep.subr.bf16.mxu0 %v3697_v25 }
 0x211   :  { %2441 = vmatpush1.bf16.msra.mxu0 %v3695_v26  ;;  %v3129_v26 = vld [vmem:[%s4054_s6] ss:$0 sm:$0xff] }
 0x212   :  { %2442 = vmatprep.subr.bf16.mxu0 %v3700_v27 }
 0x215   :  { %2443 = vmatpush1.bf16.msra.mxu0 %v3698_v28 }
 0x216   :  { %2444 = vmatprep.subr.bf16.mxu0 %v3703_v29 }
 0x219   :  { %2445 = vmatpush1.bf16.msra.mxu0 %v3701_v30 }
 0x21a   :  { %2446 = vmatprep.subr.bf16.mxu0 %v3706_v31 }
 0x21d   :  { %2447 = vmatpush1.bf16.msra.mxu0 %v3704_v32 }
 0x21e   :  { %2448 = vmatprep.subr.bf16.mxu0 %v3709_v33 }
 0x221   :  { %2449 = vmatpush1.bf16.msra.mxu0 %v3707_v34 }
 0x222   :  { %2450 = vmatprep.subr.bf16.mxu0 %v3712_v35  ;;  %v2774_v35 = vld [vmem:[%s4057_s9] sm:$0x1] }
 0x225   :  { %2451 = vmatpush1.bf16.msra.mxu0 %v3710_v36  ;;  %v3146_v36 = vld [vmem:[%s4056_s8] ss:$0 sm:$0xff] }
 0x226   :  { %2452 = vmatprep.subr.bf16.mxu0 %v3715_v37  ;;  %v2775_v37 = vunpack.c.l.bf16 %v2774_v35 }
 0x229   :  { %2453 = vmatpush1.bf16.msra.mxu0 %v3713_v38 }
 0x22a   :  { %2454 = vmatprep.subr.bf16.mxu0 %v3718_v39 }
 0x22d   :  { %2455 = vmatpush1.bf16.msra.mxu0 %v3716_v40 }
 0x22e   :  { %2456 = vmatprep.subr.bf16.mxu0 %v3721_v41 }
 0x231   :  { %2457 = vmatpush1.bf16.msra.mxu0 %v3719_v42 }
 0x232   :  { %2458 = vmatprep.subr.bf16.mxu0 %v3724_v43 }
 0x235   :  { %2459 = vmatpush1.bf16.msra.mxu0 %v3722_v44  ;;  %v2779_v44 = vrot.slane %v2775_v37, %v3970_v59 }
 0x236   :  { %2460 = vmatprep.subr.bf16.mxu0 %v3727_v46 }
 0x239   :  { %2461 = vmatpush1.bf16.msra.mxu0 %v3725_v47 }
 0x23a   :  { %2462 = vmatprep.subr.bf16.mxu0 %v3730_v49 }
 0x23d   :  { %2463 = vmatpush1.bf16.msra.mxu0 %v3728_v50 }
 0x23e   :  { %2464 = vmatprep.subr.bf16.mxu0 %v3733_v52 }
 0x241   :  { %2465 = vmatpush1.bf16.msra.mxu0 %v3731_v53 }
 0x242   :  { %2466 = vmatprep.subr.bf16.mxu0 %v3736_v55 }
 0x245   :  { %2467 = vmatpush1.bf16.msra.mxu0 %v3734_v56 }
 0x248   :  { %2469 = vmatmul.mubr.bf16.vlgmr.msra.gmra.mrb[4].mxu0 %v1997_v62 }
 0x31b   :  { %v2470_v7 = vpop.f32.mrb[4].mxu0 }
 0x31c   :  { %v3211_v8 = vadd.f32 %v2470_v7, %v2068_v5  ;;  %v2472_v9 = vpop.f32.mrb[5].mxu0 }
 0x31d   :  { %v3212_v10 = vadd.f32 %v2472_v9, %v2072_v6  ;;  %v2474_v11 = vpop.f32.mrb[6].mxu0 }
 0x31e   :  { %v2477_v13 = vmul.f32 0.2, %v3211_v8  ;;  %v2475_v15 = vpop.f32.mrb[7].mxu0 }
 0x31f   :  { %v2478_v16 = vmul.f32 0.2, %v3212_v10 }
 0x320   :  { %v2479_v17 = vmax.f32 %v3211_v8, %v2477_v13 }
 0x321   :  { %v2480_v18 = vmax.f32 %v3212_v10, %v2478_v16 }
 0x322   :  { %v2481_v21 = vpack.c.bf16 %v2479_v17, %v2479_v17 }
 0x323   :  { %v2482_v19 = vpack.c.bf16 %v2480_v18, %v2480_v18 }
 0x325   :  { %2650 = vmatprep.mubr.bf16.mxu1 %v2482_v19 }
 0x326   :  { %2651 = vmatmul.mubr.bf16.vlgmr.msra.gmra.mrb[4].mxu1 %v2481_v21 }
 0x327   :  { %3188 = vmatpush3.bf16.msra.mxu1 %v3753_v20  ;;  %3203 = vmatprep.mubr.msk.bf16.mxu1 %vm3816_vm0, %v3815_v3 }
 0x328   :  { %3189 = vmatprep.subr.bf16.mxu1 %v3815_v3 }
 0x32b   :  { %3190 = vmatpush3.bf16.msra.mxu1 %v3754_v58 }
 0x32c   :  { %3191 = vmatprep.subr.bf16.mxu1 %v3815_v3 }
 0x32f   :  { %3192 = vmatpush3.bf16.msra.mxu1 %v3755_v61 }
 0x330   :  { %3193 = vmatprep.subr.bf16.mxu1 %v3815_v3 }
 0x333   :  { %3194 = vmatpush3.bf16.msra.mxu1 %v3756_v22 }
 0x334   :  { %3195 = vmatprep.subr.bf16.mxu1 %v3815_v3 }
 0x337   :  { %3196 = vmatpush3.bf16.msra.mxu1 %v3757_v12 }
 0x338   :  { %3197 = vmatprep.subr.bf16.mxu1 %v3815_v3 }
 0x33b   :  { %3198 = vmatpush3.bf16.msra.mxu1 %v3758_v14 }
 0x33c   :  { %3199 = vmatprep.subr.bf16.mxu1 %v3815_v3 }
 0x33f   :  { %3200 = vmatpush3.bf16.msra.mxu1 %v3759_v23 }
 0x340   :  { %3201 = vmatprep.subr.bf16.mxu1 %v3815_v3 }
 0x343   :  { %3202 = vmatpush3.bf16.msra.mxu1 %v3760_v24 }
 0x3f9   :  { %v3172_v25 = vpop.f32.mrb[4].mxu1 }
 0x3fa   :  { %v3173_v27 = vpop.f32.mrb[5].mxu1 }
 0x3fb   :  { %v3174_v28 = vadd.f32 %v3173_v27, %v3172_v25  ;;  %v3175_v29 = vpop.f32.mrb[6].mxu1 }
 0x3fc   :  { %v3176_v30 = vpop.f32.mrb[7].mxu1 }
 0x3fd   :  { %v2653_v31 = vadd.f32 %v3174_v28, %v3129_v26 }
 0x3ff   :  { %v2658_v32 = vmul.f32 0.2, %v2653_v31 }
 0x401   :  { %v2659_v33 = vmax.f32 %v2653_v31, %v2658_v32 }
 0x403   :  { %v2660_v34 = vpack.c.bf16 %v2659_v33, %v2659_v33 }
 0x405   :  { %3204 = vmatmul.mubr.bf16.vlgmr.msra.gmra.mrb[8].mxu1 %v2660_v34 }
 0x4d8   :  { %v2766_v38 = vpop.f32.mrb[8].mxu1 }
 0x4d9   :  { %v2767_v39 = vadd.f32 %v3146_v36, %v2766_v38  ;;  %v3205_v40 = vpop.f32.mrb[9].mxu1 }
 0x4da   :  { %v2769_v41 = vpop.f32.mrb[10].mxu1 }
 0x4db   :  { %v2772_v42 = vmul.f32 0.2, %v2767_v39  ;;  %v3206_v43 = vpop.f32.mrb[11].mxu1 }
 0x4dd   :  { %v2773_v45 = vmax.f32 %v2767_v39, %v2772_v42 }
 0x4df   :  { %v2780_v46 = vmul.f32 %v2779_v44, %v2773_v45 }
 0x4e1   :  { %v2782_v47 = vsel %vm2781_vm1, %v2780_v46, 0.0 }
 0x4e2   :  { %2783 = vadd.xlane.f32.xlu0 %v2782_v47 }
 0x56f   :  { %v2784_v49 = vpop.xlane.xlu0 %2783 }
 0x570   :  { %v2792_v50 = vadd.f32 %v3155_v48, %v2784_v49 }
 0x572   :  { %2794 = vst.msk [vmem:[%s4059_s11] sm:$0xff] %vm2793_vm2, %v2792_v50 }
 0x573   :  { %2799 = vsyncpa [#allocation4], 1 }
 0x574   :  { %2800 = vsyncpa [#allocation6], 1 }

</bundles_post_ra>
